<compile_context>
chip_gen: v7x
topology: tpu7x:2x2x1
jax: 0.10.0
libtpu: 0.0.40
codegen_flags: <defaults>
</compile_context>

<pallas_src>
import jax
import jax.numpy as jnp
from jax.experimental import pallas as pl
from jax.experimental.pallas import tpu as pltpu

INPUT_DIM = 8
CONV_CH = 32
HIDDEN_DIM = 64
NUM_LAYERS = 2
OUTPUT_DIM = 1


def cnn_lstm_kernel(slab_ref, wc_ref, wpre_ref, whh0_ref, wih1_ref, whh1_ref,
                    b1_ref, wfc_ref, out_ref, pre_ref, c0_ref, c1_ref):
    T, tb, Ca = slab_ref.shape             # (T, TB, 3*Cin+1)
    Cc = wc_ref.shape[1]                   # 32
    G4 = whh0_ref.shape[1]                 # 4*H = 256
    H = G4 // 4
    f32 = jnp.float32
    bf16 = jnp.bfloat16

    # --- Conv1d(k=3, pad=1) via im2col + ReLU; conv bias folded via ones col ---
    slab = slab_ref[...].reshape(T * tb, Ca)
    conv = jnp.maximum(
        jnp.dot(slab, wc_ref[...], preferred_element_type=f32), 0.0)  # (T*tb, Cc)

    # --- Hoisted layer-0 input projection (+ combined, gate-prescaled bias) ---
    pre = (jnp.dot(conv.astype(bf16), wpre_ref[0:Cc, :], preferred_element_type=f32)
           + wpre_ref[Cc:Cc + 1, :].astype(f32))
    pre_ref[...] = pre.reshape(T, tb, G4)

    b1 = b1_ref[...]                       # (1, 4H) f32

    def cell(gates, c_ref):
        # i/f/o preactivations were pre-scaled by 0.5 at pack time, so a single
        # tanh over the whole (tb, 4H) slab covers every gate:
        #   sigmoid(x) = 0.5*(tanh(x/2)+1);  g gate = tanh(x).
        a = jnp.tanh(gates)
        i = 0.5 * (a[:, 0 * H:1 * H] + 1.0)
        f = 0.5 * (a[:, 1 * H:2 * H] + 1.0)
        g = a[:, 2 * H:3 * H]
        o = 0.5 * (a[:, 3 * H:4 * H] + 1.0)
        c_new = f * c_ref[...] + i * g
        c_ref[...] = c_new
        return (o * jnp.tanh(c_new)).astype(bf16)

    # c state in VMEM scratch (f32, it accumulates); h state loop-carried bf16.
    c0_ref[...] = jnp.zeros((tb, H), f32)
    c1_ref[...] = jnp.zeros((tb, H), f32)
    h0 = jnp.zeros((tb, H), bf16)
    h1 = jnp.zeros((tb, H), bf16)

    # T is small and static -> full unroll.  Loop weights are whole-ref operands
    # (no per-iteration packed-slab slices to re-materialize).
    for ts in range(T):
        # Layer-1 recurrent half: depends only on h1_{t-1}, so it runs off the
        # critical path of this step's layer-0 cell.
        r1 = jnp.dot(h1, whh1_ref[...], preferred_element_type=f32) + b1
        g0 = pre_ref[ts] + jnp.dot(h0, whh0_ref[...], preferred_element_type=f32)
        h0 = cell(g0, c0_ref)
        g1 = r1 + jnp.dot(h0, wih1_ref[...], preferred_element_type=f32)
        h1 = cell(g1, c1_ref)

    # --- Dropout(0.1): identity at inference.  Linear on last-step layer-1 h ---
    out_ref[...] = (jnp.dot(h1, wfc_ref[0:H, :], preferred_element_type=f32)
                    + wfc_ref[H:H + 1, :].astype(f32))


def cnn_lstm_forward(x, params):
    B, T, Cin = x.shape
    H = HIDDEN_DIM
    G4 = 4 * H

    # Batch tile: as tall as possible (fills MXU rows), capped at 128 so very
    # large batches still give a multi-step "parallel" grid (v7x dual-TC).
    TB = min(128, -(-B // 8) * 8)
    B_pad = -(-B // TB) * TB

    # --- im2col slab (time-major, batch padded); ones column carries conv bias ---
    x_pad = jnp.pad(x, ((0, B_pad - B), (1, 1), (0, 0)))            # (B_pad, T+2, Cin)
    taps = [x_pad[:, k:k + T, :] for k in range(3)]
    slab = jnp.concatenate(taps + [jnp.ones((B_pad, T, 1), x.dtype)], axis=-1)
    slab = jnp.transpose(slab, (1, 0, 2)).astype(jnp.bfloat16)      # (T, B_pad, 3*Cin+1)

    # --- conv weight in im2col layout, bias as the last row ---
    wc = jnp.transpose(params["conv_w"], (2, 1, 0)).reshape(3 * Cin, CONV_CH)
    wc = jnp.concatenate([wc, params["conv_b"].reshape(1, CONV_CH)], axis=0)
    wc = wc.astype(jnp.bfloat16)                                    # (3*Cin+1, 32)

    # --- gate packing: PyTorch (4H,K) -> (K,4H), gate order (i,f,g,o); fold a
    #     0.5 into the sigmoid-gate (i,f,o) columns so the kernel only needs
    #     one tanh per cell. ---
    gs = jnp.concatenate([jnp.full((2 * H,), 0.5, jnp.float32),
                          jnp.ones((H,), jnp.float32),
                          jnp.full((H,), 0.5, jnp.float32)])

    wih0 = params["w_ih0"].T * gs                                    # (Cc, 4H)
    whh0 = (params["w_hh0"].T * gs).astype(jnp.bfloat16)             # (H, 4H)
    b0 = ((params["b_ih0"] + params["b_hh0"]) * gs).reshape(1, G4)
    w_pre = jnp.concatenate([wih0, b0], axis=0).astype(jnp.bfloat16)  # (Cc+1, 4H)

    wih1 = (params["w_ih1"].T * gs).astype(jnp.bfloat16)             # (H, 4H)
    whh1 = (params["w_hh1"].T * gs).astype(jnp.bfloat16)             # (H, 4H)
    b1 = ((params["b_ih1"] + params["b_hh1"]) * gs).reshape(1, G4).astype(jnp.float32)

    # --- fc pack: [fc_w ; fc_b] -> (H+1, 1), bf16 operands (f32 accumulation) ---
    wfc = jnp.concatenate([params["fc_w"].T,
                           params["fc_b"].reshape(1, OUTPUT_DIM)],
                          axis=0).astype(jnp.bfloat16)

    out = pl.pallas_call(
        cnn_lstm_kernel,
        out_shape=jax.ShapeDtypeStruct((B_pad, OUTPUT_DIM), jnp.float32),
        grid=(B_pad // TB,),
        in_specs=[
            pl.BlockSpec((T, TB, slab.shape[-1]), lambda b: (0, b, 0)),
            pl.BlockSpec(wc.shape, lambda b: (0, 0)),
            pl.BlockSpec(w_pre.shape, lambda b: (0, 0)),
            pl.BlockSpec(whh0.shape, lambda b: (0, 0)),
            pl.BlockSpec(wih1.shape, lambda b: (0, 0)),
            pl.BlockSpec(whh1.shape, lambda b: (0, 0)),
            pl.BlockSpec(b1.shape, lambda b: (0, 0)),
            pl.BlockSpec(wfc.shape, lambda b: (0, 0)),
        ],
        out_specs=pl.BlockSpec((TB, OUTPUT_DIM), lambda b: (b, 0)),
        scratch_shapes=[
            pltpu.VMEM((T, TB, G4), jnp.float32),   # hoisted layer-0 input proj
            pltpu.VMEM((TB, H), jnp.float32),       # c state, layer 0
            pltpu.VMEM((TB, H), jnp.float32),       # c state, layer 1
        ],
        compiler_params=pltpu.CompilerParams(
            dimension_semantics=("parallel",)),
    )(slab, wc, w_pre, whh0, wih1, whh1, b1, wfc)
    return out[:B]


def cnn_lstm_reference(x, params):
    """Pure-JAX f32 reference of the same forward pass (for verification)."""
    B, T, Cin = x.shape
    x_pad = jnp.pad(x, ((0, 0), (1, 1), (0, 0)))
    wc = jnp.transpose(params["conv_w"], (2, 1, 0))
    conv = params["conv_b"].reshape(1, 1, CONV_CH)
    for k in range(3):
        conv = conv + jnp.einsum("btc,co->bto", x_pad[:, k:k + T, :], wc[k])
    conv = jnp.maximum(conv, 0.0)

    H = HIDDEN_DIM

    def cell(x_t, h, c, w_ih, w_hh, b_ih, b_hh):
        g = x_t @ w_ih.T + h @ w_hh.T + b_ih + b_hh
        i = jax.nn.sigmoid(g[:, 0*H:1*H]); f = jax.nn.sigmoid(g[:, 1*H:2*H])
        gg = jnp.tanh(g[:, 2*H:3*H]); o = jax.nn.sigmoid(g[:, 3*H:4*H])
        c = f * c + i * gg
        return o * jnp.tanh(c), c

    h0 = c0 = h1 = c1 = jnp.zeros((B, H), jnp.float32)
    for t in range(T):
        h0, c0 = cell(conv[:, t, :], h0, c0,
                      params["w_ih0"], params["w_hh0"], params["b_ih0"], params["b_hh0"])
        h1, c1 = cell(h0, h1, c1,
                      params["w_ih1"], params["w_hh1"], params["b_ih1"], params["b_hh1"])
    return h1 @ params["fc_w"].T + params["fc_b"]


def init_params(key):
    H, C, D = HIDDEN_DIM, CONV_CH, INPUT_DIM
    ks = jax.random.split(key, 12)
    u = lambda k, shape, scale: jax.random.uniform(k, shape, jnp.float32, -scale, scale)
    return {
        "conv_w": u(ks[0], (C, D, 3), (D * 3) ** -0.5),
        "conv_b": u(ks[1], (C,), (D * 3) ** -0.5),
        "w_ih0": u(ks[2], (4 * H, C), H ** -0.5),
        "w_hh0": u(ks[3], (4 * H, H), H ** -0.5),
        "b_ih0": u(ks[4], (4 * H,), H ** -0.5),
        "b_hh0": u(ks[5], (4 * H,), H ** -0.5),
        "w_ih1": u(ks[6], (4 * H, H), H ** -0.5),
        "w_hh1": u(ks[7], (4 * H, H), H ** -0.5),
        "b_ih1": u(ks[8], (4 * H,), H ** -0.5),
        "b_hh1": u(ks[9], (4 * H,), H ** -0.5),
        "fc_w": u(ks[10], (OUTPUT_DIM, H), H ** -0.5),
        "fc_b": u(ks[11], (OUTPUT_DIM,), H ** -0.5),
    }


if __name__ == "__main__":
    key = jax.random.PRNGKey(0)
    k_x, k_p = jax.random.split(key)
    B, T = 2, 8
    x = jax.random.normal(k_x, (B, T, INPUT_DIM), jnp.float32)
    params = init_params(k_p)

    out = jax.block_until_ready(cnn_lstm_forward(x, params))
    ref = jax.block_until_ready(cnn_lstm_reference(x, params))

    assert out.shape == (B, OUTPUT_DIM)
    # bf16 MXU operands (f32 accumulation) -> looser tolerance than pure-f32.
    assert jnp.allclose(out, ref, atol=3e-2, rtol=3e-2), (out, ref)
    print("KERNEL_OK")
</pallas_src>

<mosaic_0001>
module attributes {stable_mosaic.version = 11 : i64} {
  func.func @cnn_lstm_kernel(%arg0: i32, %arg1: memref<8x8x25xbf16, #tpu.memory_space<vmem>>, %arg2: memref<25x32xbf16, #tpu.memory_space<vmem>>, %arg3: memref<33x256xbf16, #tpu.memory_space<vmem>>, %arg4: memref<64x256xbf16, #tpu.memory_space<vmem>>, %arg5: memref<64x256xbf16, #tpu.memory_space<vmem>>, %arg6: memref<64x256xbf16, #tpu.memory_space<vmem>>, %arg7: memref<1x256xf32, #tpu.memory_space<vmem>>, %arg8: memref<65x1xbf16, #tpu.memory_space<vmem>>, %arg9: memref<8x1xf32, #tpu.memory_space<vmem>>, %arg10: memref<8x8x256xf32, #tpu.memory_space<vmem>>, %arg11: memref<8x64xf32, #tpu.memory_space<vmem>>, %arg12: memref<8x64xf32, #tpu.memory_space<vmem>>) attributes {dimension_semantics = [#tpu.dimension_semantics<parallel>], iteration_bounds = array<i64: 1>, scalar_prefetch = 0 : i64, scratch_operands = 3 : i64, tpu.core_type = #tpu.core_type<tc>, window_params = [{transform_indices = @transform_0, window_bounds = array<i64: 8, 8, 25>}, {pipeline_mode = #tpu.pipeline_mode<synchronous>, transform_indices = @transform_1, window_bounds = array<i64: 25, 32>}, {pipeline_mode = #tpu.pipeline_mode<synchronous>, transform_indices = @transform_2, window_bounds = array<i64: 33, 256>}, {pipeline_mode = #tpu.pipeline_mode<synchronous>, transform_indices = @transform_3, window_bounds = array<i64: 64, 256>}, {pipeline_mode = #tpu.pipeline_mode<synchronous>, transform_indices = @transform_4, window_bounds = array<i64: 64, 256>}, {pipeline_mode = #tpu.pipeline_mode<synchronous>, transform_indices = @transform_5, window_bounds = array<i64: 64, 256>}, {pipeline_mode = #tpu.pipeline_mode<synchronous>, transform_indices = @transform_6, window_bounds = array<i64: 1, 256>}, {pipeline_mode = #tpu.pipeline_mode<synchronous>, transform_indices = @transform_7, window_bounds = array<i64: 65, 1>}, {transform_indices = @transform_8, window_bounds = array<i64: 8, 1>}]} {
    %c0 = arith.constant 0 : index
    %c0_0 = arith.constant 0 : index
    %c0_1 = arith.constant 0 : index
    %0 = vector.load %arg1[%c0, %c0_0, %c0_1] : memref<8x8x25xbf16, #tpu.memory_space<vmem>>, vector<8x8x25xbf16>
    %1 = vector.shape_cast %0 : vector<8x8x25xbf16> to vector<64x25xbf16>
    %c0_2 = arith.constant 0 : index
    %c0_3 = arith.constant 0 : index
    %2 = vector.load %arg2[%c0_2, %c0_3] : memref<25x32xbf16, #tpu.memory_space<vmem>>, vector<25x32xbf16>
    %cst = arith.constant dense<0.000000e+00> : vector<64x32xf32>
    %3 = tpu.matmul %1, %2, %cst {dimension_numbers = #tpu.dot_dimension_numbers<[1], [0], [0], [1], [0, 0, 1, 1], [], []>} : vector<64x25xbf16>, vector<25x32xbf16>, vector<64x32xf32> -> vector<64x32xf32>
    %cst_4 = arith.constant 0.000000e+00 : f32
    %4 = vector.broadcast %cst_4 : f32 to vector<64x32xf32>
    %5 = arith.maximumf %3, %4 : vector<64x32xf32>
    %6 = arith.truncf %5 : vector<64x32xf32> to vector<64x32xbf16>
    %c0_5 = arith.constant 0 : index
    %c0_6 = arith.constant 0 : index
    %7 = vector.load %arg3[%c0_5, %c0_6] : memref<33x256xbf16, #tpu.memory_space<vmem>>, vector<32x256xbf16>
    %cst_7 = arith.constant dense<0.000000e+00> : vector<64x256xf32>
    %8 = tpu.matmul %6, %7, %cst_7 {dimension_numbers = #tpu.dot_dimension_numbers<[1], [0], [0], [1], [0, 0, 1, 1], [], []>} : vector<64x32xbf16>, vector<32x256xbf16>, vector<64x256xf32> -> vector<64x256xf32>
    %c32 = arith.constant 32 : index
    %c0_8 = arith.constant 0 : index
    %9 = vector.load %arg3[%c32, %c0_8] : memref<33x256xbf16, #tpu.memory_space<vmem>>, vector<1x256xbf16>
    %10 = arith.extf %9 : vector<1x256xbf16> to vector<1x256xf32>
    %11 = vector.broadcast %10 : vector<1x256xf32> to vector<64x256xf32>
    %12 = arith.addf %8, %11 : vector<64x256xf32>
    %13 = vector.shape_cast %12 : vector<64x256xf32> to vector<8x8x256xf32>
    %c0_9 = arith.constant 0 : index
    %c0_10 = arith.constant 0 : index
    %c0_11 = arith.constant 0 : index
    %14 = vector.load %arg10[%c0_9, %c0_10, %c0_11] : memref<8x8x256xf32, #tpu.memory_space<vmem>>, vector<8x8x256xf32>
    tpu.vector_store %arg10[%c0_9, %c0_10, %c0_11], %13 {strides = array<i32>} : memref<8x8x256xf32, #tpu.memory_space<vmem>>, vector<8x8x256xf32>,
    %c0_12 = arith.constant 0 : index
    %c0_13 = arith.constant 0 : index
    %15 = vector.load %arg7[%c0_12, %c0_13] : memref<1x256xf32, #tpu.memory_space<vmem>>, vector<1x256xf32>
    %cst_14 = arith.constant 0.000000e+00 : f32
    %16 = vector.broadcast %cst_14 : f32 to vector<8x64xf32>
    %c0_15 = arith.constant 0 : index
    %c0_16 = arith.constant 0 : index
    %17 = vector.load %arg11[%c0_15, %c0_16] : memref<8x64xf32, #tpu.memory_space<vmem>>, vector<8x64xf32>
    tpu.vector_store %arg11[%c0_15, %c0_16], %16 {strides = array<i32>} : memref<8x64xf32, #tpu.memory_space<vmem>>, vector<8x64xf32>,
    %cst_17 = arith.constant 0.000000e+00 : f32
    %18 = vector.broadcast %cst_17 : f32 to vector<8x64xf32>
    %c0_18 = arith.constant 0 : index
    %c0_19 = arith.constant 0 : index
    %19 = vector.load %arg12[%c0_18, %c0_19] : memref<8x64xf32, #tpu.memory_space<vmem>>, vector<8x64xf32>
    tpu.vector_store %arg12[%c0_18, %c0_19], %18 {strides = array<i32>} : memref<8x64xf32, #tpu.memory_space<vmem>>, vector<8x64xf32>,
    %cst_20 = arith.constant 0.000000e+00 : bf16
    %20 = vector.broadcast %cst_20 : bf16 to vector<8x64xbf16>
    %cst_21 = arith.constant 0.000000e+00 : bf16
    %21 = vector.broadcast %cst_21 : bf16 to vector<8x64xbf16>
    %c0_22 = arith.constant 0 : index
    %c0_23 = arith.constant 0 : index
    %22 = vector.load %arg6[%c0_22, %c0_23] : memref<64x256xbf16, #tpu.memory_space<vmem>>, vector<64x256xbf16>
    %cst_24 = arith.constant dense<0.000000e+00> : vector<8x256xf32>
    %23 = tpu.matmul %21, %22, %cst_24 {dimension_numbers = #tpu.dot_dimension_numbers<[1], [0], [0], [1], [0, 0, 1, 1], [], []>} : vector<8x64xbf16>, vector<64x256xbf16>, vector<8x256xf32> -> vector<8x256xf32>
    %24 = vector.broadcast %15 : vector<1x256xf32> to vector<8x256xf32>
    %25 = arith.addf %23, %24 : vector<8x256xf32>
    %c0_25 = arith.constant 0 : index
    %c0_26 = arith.constant 0 : index
    %c0_27 = arith.constant 0 : index
    %26 = vector.load %arg10[%c0_25, %c0_26, %c0_27] : memref<8x8x256xf32, #tpu.memory_space<vmem>>, vector<1x8x256xf32>
    %27 = vector.shape_cast %26 : vector<1x8x256xf32> to vector<8x256xf32>
    %c0_28 = arith.constant 0 : index
    %c0_29 = arith.constant 0 : index
    %28 = vector.load %arg4[%c0_28, %c0_29] : memref<64x256xbf16, #tpu.memory_space<vmem>>, vector<64x256xbf16>
    %cst_30 = arith.constant dense<0.000000e+00> : vector<8x256xf32>
    %29 = tpu.matmul %20, %28, %cst_30 {dimension_numbers = #tpu.dot_dimension_numbers<[1], [0], [0], [1], [0, 0, 1, 1], [], []>} : vector<8x64xbf16>, vector<64x256xbf16>, vector<8x256xf32> -> vector<8x256xf32>
    %30 = arith.addf %27, %29 : vector<8x256xf32>
    %31 = math.tanh %30 : vector<8x256xf32>
    %32 = vector.extract_strided_slice %31 {offsets = [0, 0], sizes = [8, 64], strides = [1, 1]} : vector<8x256xf32> to vector<8x64xf32>
    %cst_31 = arith.constant 1.000000e+00 : f32
    %33 = vector.broadcast %cst_31 : f32 to vector<8x64xf32>
    %34 = arith.addf %32, %33 : vector<8x64xf32>
    %cst_32 = arith.constant 5.000000e-01 : f32
    %35 = vector.broadcast %cst_32 : f32 to vector<8x64xf32>
    %36 = arith.mulf %35, %34 : vector<8x64xf32>
    %37 = vector.extract_strided_slice %31 {offsets = [0, 64], sizes = [8, 64], strides = [1, 1]} : vector<8x256xf32> to vector<8x64xf32>
    %cst_33 = arith.constant 1.000000e+00 : f32
    %38 = vector.broadcast %cst_33 : f32 to vector<8x64xf32>
    %39 = arith.addf %37, %38 : vector<8x64xf32>
    %cst_34 = arith.constant 5.000000e-01 : f32
    %40 = vector.broadcast %cst_34 : f32 to vector<8x64xf32>
    %41 = arith.mulf %40, %39 : vector<8x64xf32>
    %42 = vector.extract_strided_slice %31 {offsets = [0, 128], sizes = [8, 64], strides = [1, 1]} : vector<8x256xf32> to vector<8x64xf32>
    %43 = vector.extract_strided_slice %31 {offsets = [0, 192], sizes = [8, 64], strides = [1, 1]} : vector<8x256xf32> to vector<8x64xf32>
    %cst_35 = arith.constant 1.000000e+00 : f32
    %44 = vector.broadcast %cst_35 : f32 to vector<8x64xf32>
    %45 = arith.addf %43, %44 : vector<8x64xf32>
    %cst_36 = arith.constant 5.000000e-01 : f32
    %46 = vector.broadcast %cst_36 : f32 to vector<8x64xf32>
    %47 = arith.mulf %46, %45 : vector<8x64xf32>
    %c0_37 = arith.constant 0 : index
    %c0_38 = arith.constant 0 : index
    %48 = vector.load %arg11[%c0_37, %c0_38] : memref<8x64xf32, #tpu.memory_space<vmem>>, vector<8x64xf32>
    %49 = arith.mulf %41, %48 : vector<8x64xf32>
    %50 = arith.mulf %36, %42 : vector<8x64xf32>
    %51 = arith.addf %49, %50 : vector<8x64xf32>
    %c0_39 = arith.constant 0 : index
    %c0_40 = arith.constant 0 : index
    %52 = vector.load %arg11[%c0_39, %c0_40] : memref<8x64xf32, #tpu.memory_space<vmem>>, vector<8x64xf32>
    tpu.vector_store %arg11[%c0_39, %c0_40], %51 {strides = array<i32>} : memref<8x64xf32, #tpu.memory_space<vmem>>, vector<8x64xf32>,
    %53 = math.tanh %51 : vector<8x64xf32>
    %54 = arith.mulf %47, %53 : vector<8x64xf32>
    %55 = arith.truncf %54 : vector<8x64xf32> to vector<8x64xbf16>
    %c0_41 = arith.constant 0 : index
    %c0_42 = arith.constant 0 : index
    %56 = vector.load %arg5[%c0_41, %c0_42] : memref<64x256xbf16, #tpu.memory_space<vmem>>, vector<64x256xbf16>
    %cst_43 = arith.constant dense<0.000000e+00> : vector<8x256xf32>
    %57 = tpu.matmul %55, %56, %cst_43 {dimension_numbers = #tpu.dot_dimension_numbers<[1], [0], [0], [1], [0, 0, 1, 1], [], []>} : vector<8x64xbf16>, vector<64x256xbf16>, vector<8x256xf32> -> vector<8x256xf32>
    %58 = arith.addf %25, %57 : vector<8x256xf32>
    %59 = math.tanh %58 : vector<8x256xf32>
    %60 = vector.extract_strided_slice %59 {offsets = [0, 0], sizes = [8, 64], strides = [1, 1]} : vector<8x256xf32> to vector<8x64xf32>
    %cst_44 = arith.constant 1.000000e+00 : f32
    %61 = vector.broadcast %cst_44 : f32 to vector<8x64xf32>
    %62 = arith.addf %60, %61 : vector<8x64xf32>
    %cst_45 = arith.constant 5.000000e-01 : f32
    %63 = vector.broadcast %cst_45 : f32 to vector<8x64xf32>
    %64 = arith.mulf %63, %62 : vector<8x64xf32>
    %65 = vector.extract_strided_slice %59 {offsets = [0, 64], sizes = [8, 64], strides = [1, 1]} : vector<8x256xf32> to vector<8x64xf32>
    %cst_46 = arith.constant 1.000000e+00 : f32
    %66 = vector.broadcast %cst_46 : f32 to vector<8x64xf32>
    %67 = arith.addf %65, %66 : vector<8x64xf32>
    %cst_47 = arith.constant 5.000000e-01 : f32
    %68 = vector.broadcast %cst_47 : f32 to vector<8x64xf32>
    %69 = arith.mulf %68, %67 : vector<8x64xf32>
    %70 = vector.extract_strided_slice %59 {offsets = [0, 128], sizes = [8, 64], strides = [1, 1]} : vector<8x256xf32> to vector<8x64xf32>
    %71 = vector.extract_strided_slice %59 {offsets = [0, 192], sizes = [8, 64], strides = [1, 1]} : vector<8x256xf32> to vector<8x64xf32>
    %cst_48 = arith.constant 1.000000e+00 : f32
    %72 = vector.broadcast %cst_48 : f32 to vector<8x64xf32>
    %73 = arith.addf %71, %72 : vector<8x64xf32>
    %cst_49 = arith.constant 5.000000e-01 : f32
    %74 = vector.broadcast %cst_49 : f32 to vector<8x64xf32>
    %75 = arith.mulf %74, %73 : vector<8x64xf32>
    %c0_50 = arith.constant 0 : index
    %c0_51 = arith.constant 0 : index
    %76 = vector.load %arg12[%c0_50, %c0_51] : memref<8x64xf32, #tpu.memory_space<vmem>>, vector<8x64xf32>
    %77 = arith.mulf %69, %76 : vector<8x64xf32>
    %78 = arith.mulf %64, %70 : vector<8x64xf32>
    %79 = arith.addf %77, %78 : vector<8x64xf32>
    %c0_52 = arith.constant 0 : index
    %c0_53 = arith.constant 0 : index
    %80 = vector.load %arg12[%c0_52, %c0_53] : memref<8x64xf32, #tpu.memory_space<vmem>>, vector<8x64xf32>
    tpu.vector_store %arg12[%c0_52, %c0_53], %79 {strides = array<i32>} : memref<8x64xf32, #tpu.memory_space<vmem>>, vector<8x64xf32>,
    %81 = math.tanh %79 : vector<8x64xf32>
    %82 = arith.mulf %75, %81 : vector<8x64xf32>
    %83 = arith.truncf %82 : vector<8x64xf32> to vector<8x64xbf16>
    %c0_54 = arith.constant 0 : index
    %c0_55 = arith.constant 0 : index
    %84 = vector.load %arg6[%c0_54, %c0_55] : memref<64x256xbf16, #tpu.memory_space<vmem>>, vector<64x256xbf16>
    %cst_56 = arith.constant dense<0.000000e+00> : vector<8x256xf32>
    %85 = tpu.matmul %83, %84, %cst_56 {dimension_numbers = #tpu.dot_dimension_numbers<[1], [0], [0], [1], [0, 0, 1, 1], [], []>} : vector<8x64xbf16>, vector<64x256xbf16>, vector<8x256xf32> -> vector<8x256xf32>
    %86 = vector.broadcast %15 : vector<1x256xf32> to vector<8x256xf32>
    %87 = arith.addf %85, %86 : vector<8x256xf32>
    %c1 = arith.constant 1 : index
    %c0_57 = arith.constant 0 : index
    %c0_58 = arith.constant 0 : index
    %88 = vector.load %arg10[%c1, %c0_57, %c0_58] : memref<8x8x256xf32, #tpu.memory_space<vmem>>, vector<1x8x256xf32>
    %89 = vector.shape_cast %88 : vector<1x8x256xf32> to vector<8x256xf32>
    %c0_59 = arith.constant 0 : index
    %c0_60 = arith.constant 0 : index
    %90 = vector.load %arg4[%c0_59, %c0_60] : memref<64x256xbf16, #tpu.memory_space<vmem>>, vector<64x256xbf16>
    %cst_61 = arith.constant dense<0.000000e+00> : vector<8x256xf32>
    %91 = tpu.matmul %55, %90, %cst_61 {dimension_numbers = #tpu.dot_dimension_numbers<[1], [0], [0], [1], [0, 0, 1, 1], [], []>} : vector<8x64xbf16>, vector<64x256xbf16>, vector<8x256xf32> -> vector<8x256xf32>
    %92 = arith.addf %89, %91 : vector<8x256xf32>
    %93 = math.tanh %92 : vector<8x256xf32>
    %94 = vector.extract_strided_slice %93 {offsets = [0, 0], sizes = [8, 64], strides = [1, 1]} : vector<8x256xf32> to vector<8x64xf32>
    %cst_62 = arith.constant 1.000000e+00 : f32
    %95 = vector.broadcast %cst_62 : f32 to vector<8x64xf32>
    %96 = arith.addf %94, %95 : vector<8x64xf32>
    %cst_63 = arith.constant 5.000000e-01 : f32
    %97 = vector.broadcast %cst_63 : f32 to vector<8x64xf32>
    %98 = arith.mulf %97, %96 : vector<8x64xf32>
    %99 = vector.extract_strided_slice %93 {offsets = [0, 64], sizes = [8, 64], strides = [1, 1]} : vector<8x256xf32> to vector<8x64xf32>
    %cst_64 = arith.constant 1.000000e+00 : f32
    %100 = vector.broadcast %cst_64 : f32 to vector<8x64xf32>
    %101 = arith.addf %99, %100 : vector<8x64xf32>
    %cst_65 = arith.constant 5.000000e-01 : f32
    %102 = vector.broadcast %cst_65 : f32 to vector<8x64xf32>
    %103 = arith.mulf %102, %101 : vector<8x64xf32>
    %104 = vector.extract_strided_slice %93 {offsets = [0, 128], sizes = [8, 64], strides = [1, 1]} : vector<8x256xf32> to vector<8x64xf32>
    %105 = vector.extract_strided_slice %93 {offsets = [0, 192], sizes = [8, 64], strides = [1, 1]} : vector<8x256xf32> to vector<8x64xf32>
    %cst_66 = arith.constant 1.000000e+00 : f32
    %106 = vector.broadcast %cst_66 : f32 to vector<8x64xf32>
    %107 = arith.addf %105, %106 : vector<8x64xf32>
    %cst_67 = arith.constant 5.000000e-01 : f32
    %108 = vector.broadcast %cst_67 : f32 to vector<8x64xf32>
    %109 = arith.mulf %108, %107 : vector<8x64xf32>
    %c0_68 = arith.constant 0 : index
    %c0_69 = arith.constant 0 : index
    %110 = vector.load %arg11[%c0_68, %c0_69] : memref<8x64xf32, #tpu.memory_space<vmem>>, vector<8x64xf32>
    %111 = arith.mulf %103, %110 : vector<8x64xf32>
    %112 = arith.mulf %98, %104 : vector<8x64xf32>
    %113 = arith.addf %111, %112 : vector<8x64xf32>
    %c0_70 = arith.constant 0 : index
    %c0_71 = arith.constant 0 : index
    %114 = vector.load %arg11[%c0_70, %c0_71] : memref<8x64xf32, #tpu.memory_space<vmem>>, vector<8x64xf32>
    tpu.vector_store %arg11[%c0_70, %c0_71], %113 {strides = array<i32>} : memref<8x64xf32, #tpu.memory_space<vmem>>, vector<8x64xf32>,
    %115 = math.tanh %113 : vector<8x64xf32>
    %116 = arith.mulf %109, %115 : vector<8x64xf32>
    %117 = arith.truncf %116 : vector<8x64xf32> to vector<8x64xbf16>
    %c0_72 = arith.constant 0 : index
    %c0_73 = arith.constant 0 : index
    %118 = vector.load %arg5[%c0_72, %c0_73] : memref<64x256xbf16, #tpu.memory_space<vmem>>, vector<64x256xbf16>
    %cst_74 = arith.constant dense<0.000000e+00> : vector<8x256xf32>
    %119 = tpu.matmul %117, %118, %cst_74 {dimension_numbers = #tpu.dot_dimension_numbers<[1], [0], [0], [1], [0, 0, 1, 1], [], []>} : vector<8x64xbf16>, vector<64x256xbf16>, vector<8x256xf32> -> vector<8x256xf32>
    %120 = arith.addf %87, %119 : vector<8x256xf32>
    %121 = math.tanh %120 : vector<8x256xf32>
    %122 = vector.extract_strided_slice %121 {offsets = [0, 0], sizes = [8, 64], strides = [1, 1]} : vector<8x256xf32> to vector<8x64xf32>
    %cst_75 = arith.constant 1.000000e+00 : f32
    %123 = vector.broadcast %cst_75 : f32 to vector<8x64xf32>
    %124 = arith.addf %122, %123 : vector<8x64xf32>
    %cst_76 = arith.constant 5.000000e-01 : f32
    %125 = vector.broadcast %cst_76 : f32 to vector<8x64xf32>
    %126 = arith.mulf %125, %124 : vector<8x64xf32>
    %127 = vector.extract_strided_slice %121 {offsets = [0, 64], sizes = [8, 64], strides = [1, 1]} : vector<8x256xf32> to vector<8x64xf32>
    %cst_77 = arith.constant 1.000000e+00 : f32
    %128 = vector.broadcast %cst_77 : f32 to vector<8x64xf32>
    %129 = arith.addf %127, %128 : vector<8x64xf32>
    %cst_78 = arith.constant 5.000000e-01 : f32
    %130 = vector.broadcast %cst_78 : f32 to vector<8x64xf32>
    %131 = arith.mulf %130, %129 : vector<8x64xf32>
    %132 = vector.extract_strided_slice %121 {offsets = [0, 128], sizes = [8, 64], strides = [1, 1]} : vector<8x256xf32> to vector<8x64xf32>
    %133 = vector.extract_strided_slice %121 {offsets = [0, 192], sizes = [8, 64], strides = [1, 1]} : vector<8x256xf32> to vector<8x64xf32>
    %cst_79 = arith.constant 1.000000e+00 : f32
    %134 = vector.broadcast %cst_79 : f32 to vector<8x64xf32>
    %135 = arith.addf %133, %134 : vector<8x64xf32>
    %cst_80 = arith.constant 5.000000e-01 : f32
    %136 = vector.broadcast %cst_80 : f32 to vector<8x64xf32>
    %137 = arith.mulf %136, %135 : vector<8x64xf32>
    %c0_81 = arith.constant 0 : index
    %c0_82 = arith.constant 0 : index
    %138 = vector.load %arg12[%c0_81, %c0_82] : memref<8x64xf32, #tpu.memory_space<vmem>>, vector<8x64xf32>
    %139 = arith.mulf %131, %138 : vector<8x64xf32>
    %140 = arith.mulf %126, %132 : vector<8x64xf32>
    %141 = arith.addf %139, %140 : vector<8x64xf32>
    %c0_83 = arith.constant 0 : index
    %c0_84 = arith.constant 0 : index
    %142 = vector.load %arg12[%c0_83, %c0_84] : memref<8x64xf32, #tpu.memory_space<vmem>>, vector<8x64xf32>
    tpu.vector_store %arg12[%c0_83, %c0_84], %141 {strides = array<i32>} : memref<8x64xf32, #tpu.memory_space<vmem>>, vector<8x64xf32>,
    %143 = math.tanh %141 : vector<8x64xf32>
    %144 = arith.mulf %137, %143 : vector<8x64xf32>
    %145 = arith.truncf %144 : vector<8x64xf32> to vector<8x64xbf16>
    %c0_85 = arith.constant 0 : index
    %c0_86 = arith.constant 0 : index
    %146 = vector.load %arg6[%c0_85, %c0_86] : memref<64x256xbf16, #tpu.memory_space<vmem>>, vector<64x256xbf16>
    %cst_87 = arith.constant dense<0.000000e+00> : vector<8x256xf32>
    %147 = tpu.matmul %145, %146, %cst_87 {dimension_numbers = #tpu.dot_dimension_numbers<[1], [0], [0], [1], [0, 0, 1, 1], [], []>} : vector<8x64xbf16>, vector<64x256xbf16>, vector<8x256xf32> -> vector<8x256xf32>
    %148 = vector.broadcast %15 : vector<1x256xf32> to vector<8x256xf32>
    %149 = arith.addf %147, %148 : vector<8x256xf32>
    %c2 = arith.constant 2 : index
    %c0_88 = arith.constant 0 : index
    %c0_89 = arith.constant 0 : index
    %150 = vector.load %arg10[%c2, %c0_88, %c0_89] : memref<8x8x256xf32, #tpu.memory_space<vmem>>, vector<1x8x256xf32>
    %151 = vector.shape_cast %150 : vector<1x8x256xf32> to vector<8x256xf32>
    %c0_90 = arith.constant 0 : index
    %c0_91 = arith.constant 0 : index
    %152 = vector.load %arg4[%c0_90, %c0_91] : memref<64x256xbf16, #tpu.memory_space<vmem>>, vector<64x256xbf16>
    %cst_92 = arith.constant dense<0.000000e+00> : vector<8x256xf32>
    %153 = tpu.matmul %117, %152, %cst_92 {dimension_numbers = #tpu.dot_dimension_numbers<[1], [0], [0], [1], [0, 0, 1, 1], [], []>} : vector<8x64xbf16>, vector<64x256xbf16>, vector<8x256xf32> -> vector<8x256xf32>
    %154 = arith.addf %151, %153 : vector<8x256xf32>
    %155 = math.tanh %154 : vector<8x256xf32>
    %156 = vector.extract_strided_slice %155 {offsets = [0, 0], sizes = [8, 64], strides = [1, 1]} : vector<8x256xf32> to vector<8x64xf32>
    %cst_93 = arith.constant 1.000000e+00 : f32
    %157 = vector.broadcast %cst_93 : f32 to vector<8x64xf32>
    %158 = arith.addf %156, %157 : vector<8x64xf32>
    %cst_94 = arith.constant 5.000000e-01 : f32
    %159 = vector.broadcast %cst_94 : f32 to vector<8x64xf32>
    %160 = arith.mulf %159, %158 : vector<8x64xf32>
    %161 = vector.extract_strided_slice %155 {offsets = [0, 64], sizes = [8, 64], strides = [1, 1]} : vector<8x256xf32> to vector<8x64xf32>
    %cst_95 = arith.constant 1.000000e+00 : f32
    %162 = vector.broadcast %cst_95 : f32 to vector<8x64xf32>
    %163 = arith.addf %161, %162 : vector<8x64xf32>
    %cst_96 = arith.constant 5.000000e-01 : f32
    %164 = vector.broadcast %cst_96 : f32 to vector<8x64xf32>
    %165 = arith.mulf %164, %163 : vector<8x64xf32>
    %166 = vector.extract_strided_slice %155 {offsets = [0, 128], sizes = [8, 64], strides = [1, 1]} : vector<8x256xf32> to vector<8x64xf32>
    %167 = vector.extract_strided_slice %155 {offsets = [0, 192], sizes = [8, 64], strides = [1, 1]} : vector<8x256xf32> to vector<8x64xf32>
    %cst_97 = arith.constant 1.000000e+00 : f32
    %168 = vector.broadcast %cst_97 : f32 to vector<8x64xf32>
    %169 = arith.addf %167, %168 : vector<8x64xf32>
    %cst_98 = arith.constant 5.000000e-01 : f32
    %170 = vector.broadcast %cst_98 : f32 to vector<8x64xf32>
    %171 = arith.mulf %170, %169 : vector<8x64xf32>
    %c0_99 = arith.constant 0 : index
    %c0_100 = arith.constant 0 : index
    %172 = vector.load %arg11[%c0_99, %c0_100] : memref<8x64xf32, #tpu.memory_space<vmem>>, vector<8x64xf32>
    %173 = arith.mulf %165, %172 : vector<8x64xf32>
    %174 = arith.mulf %160, %166 : vector<8x64xf32>
    %175 = arith.addf %173, %174 : vector<8x64xf32>
    %c0_101 = arith.constant 0 : index
    %c0_102 = arith.constant 0 : index
    %176 = vector.load %arg11[%c0_101, %c0_102] : memref<8x64xf32, #tpu.memory_space<vmem>>, vector<8x64xf32>
    tpu.vector_store %arg11[%c0_101, %c0_102], %175 {strides = array<i32>} : memref<8x64xf32, #tpu.memory_space<vmem>>, vector<8x64xf32>,
    %177 = math.tanh %175 : vector<8x64xf32>
    %178 = arith.mulf %171, %177 : vector<8x64xf32>
    %179 = arith.truncf %178 : vector<8x64xf32> to vector<8x64xbf16>
    %c0_103 = arith.constant 0 : index
    %c0_104 = arith.constant 0 : index
    %180 = vector.load %arg5[%c0_103, %c0_104] : memref<64x256xbf16, #tpu.memory_space<vmem>>, vector<64x256xbf16>
    %cst_105 = arith.constant dense<0.000000e+00> : vector<8x256xf32>
    %181 = tpu.matmul %179, %180, %cst_105 {dimension_numbers = #tpu.dot_dimension_numbers<[1], [0], [0], [1], [0, 0, 1, 1], [], []>} : vector<8x64xbf16>, vector<64x256xbf16>, vector<8x256xf32> -> vector<8x256xf32>
    %182 = arith.addf %149, %181 : vector<8x256xf32>
    %183 = math.tanh %182 : vector<8x256xf32>
    %184 = vector.extract_strided_slice %183 {offsets = [0, 0], sizes = [8, 64], strides = [1, 1]} : vector<8x256xf32> to vector<8x64xf32>
    %cst_106 = arith.constant 1.000000e+00 : f32
    %185 = vector.broadcast %cst_106 : f32 to vector<8x64xf32>
    %186 = arith.addf %184, %185 : vector<8x64xf32>
    %cst_107 = arith.constant 5.000000e-01 : f32
    %187 = vector.broadcast %cst_107 : f32 to vector<8x64xf32>
    %188 = arith.mulf %187, %186 : vector<8x64xf32>
    %189 = vector.extract_strided_slice %183 {offsets = [0, 64], sizes = [8, 64], strides = [1, 1]} : vector<8x256xf32> to vector<8x64xf32>
    %cst_108 = arith.constant 1.000000e+00 : f32
    %190 = vector.broadcast %cst_108 : f32 to vector<8x64xf32>
    %191 = arith.addf %189, %190 : vector<8x64xf32>
    %cst_109 = arith.constant 5.000000e-01 : f32
    %192 = vector.broadcast %cst_109 : f32 to vector<8x64xf32>
    %193 = arith.mulf %192, %191 : vector<8x64xf32>
    %194 = vector.extract_strided_slice %183 {offsets = [0, 128], sizes = [8, 64], strides = [1, 1]} : vector<8x256xf32> to vector<8x64xf32>
    %195 = vector.extract_strided_slice %183 {offsets = [0, 192], sizes = [8, 64], strides = [1, 1]} : vector<8x256xf32> to vector<8x64xf32>
    %cst_110 = arith.constant 1.000000e+00 : f32
    %196 = vector.broadcast %cst_110 : f32 to vector<8x64xf32>
    %197 = arith.addf %195, %196 : vector<8x64xf32>
    %cst_111 = arith.constant 5.000000e-01 : f32
    %198 = vector.broadcast %cst_111 : f32 to vector<8x64xf32>
    %199 = arith.mulf %198, %197 : vector<8x64xf32>
    %c0_112 = arith.constant 0 : index
    %c0_113 = arith.constant 0 : index
    %200 = vector.load %arg12[%c0_112, %c0_113] : memref<8x64xf32, #tpu.memory_space<vmem>>, vector<8x64xf32>
    %201 = arith.mulf %193, %200 : vector<8x64xf32>
    %202 = arith.mulf %188, %194 : vector<8x64xf32>
    %203 = arith.addf %201, %202 : vector<8x64xf32>
    %c0_114 = arith.constant 0 : index
    %c0_115 = arith.constant 0 : index
    %204 = vector.load %arg12[%c0_114, %c0_115] : memref<8x64xf32, #tpu.memory_space<vmem>>, vector<8x64xf32>
    tpu.vector_store %arg12[%c0_114, %c0_115], %203 {strides = array<i32>} : memref<8x64xf32, #tpu.memory_space<vmem>>, vector<8x64xf32>,
    %205 = math.tanh %203 : vector<8x64xf32>
    %206 = arith.mulf %199, %205 : vector<8x64xf32>
    %207 = arith.truncf %206 : vector<8x64xf32> to vector<8x64xbf16>
    %c0_116 = arith.constant 0 : index
    %c0_117 = arith.constant 0 : index
    %208 = vector.load %arg6[%c0_116, %c0_117] : memref<64x256xbf16, #tpu.memory_space<vmem>>, vector<64x256xbf16>
    %cst_118 = arith.constant dense<0.000000e+00> : vector<8x256xf32>
    %209 = tpu.matmul %207, %208, %cst_118 {dimension_numbers = #tpu.dot_dimension_numbers<[1], [0], [0], [1], [0, 0, 1, 1], [], []>} : vector<8x64xbf16>, vector<64x256xbf16>, vector<8x256xf32> -> vector<8x256xf32>
    %210 = vector.broadcast %15 : vector<1x256xf32> to vector<8x256xf32>
    %211 = arith.addf %209, %210 : vector<8x256xf32>
    %c3 = arith.constant 3 : index
    %c0_119 = arith.constant 0 : index
    %c0_120 = arith.constant 0 : index
    %212 = vector.load %arg10[%c3, %c0_119, %c0_120] : memref<8x8x256xf32, #tpu.memory_space<vmem>>, vector<1x8x256xf32>
    %213 = vector.shape_cast %212 : vector<1x8x256xf32> to vector<8x256xf32>
    %c0_121 = arith.constant 0 : index
    %c0_122 = arith.constant 0 : index
    %214 = vector.load %arg4[%c0_121, %c0_122] : memref<64x256xbf16, #tpu.memory_space<vmem>>, vector<64x256xbf16>
    %cst_123 = arith.constant dense<0.000000e+00> : vector<8x256xf32>
    %215 = tpu.matmul %179, %214, %cst_123 {dimension_numbers = #tpu.dot_dimension_numbers<[1], [0], [0], [1], [0, 0, 1, 1], [], []>} : vector<8x64xbf16>, vector<64x256xbf16>, vector<8x256xf32> -> vector<8x256xf32>
    %216 = arith.addf %213, %215 : vector<8x256xf32>
    %217 = math.tanh %216 : vector<8x256xf32>
    %218 = vector.extract_strided_slice %217 {offsets = [0, 0], sizes = [8, 64], strides = [1, 1]} : vector<8x256xf32> to vector<8x64xf32>
    %cst_124 = arith.constant 1.000000e+00 : f32
    %219 = vector.broadcast %cst_124 : f32 to vector<8x64xf32>
    %220 = arith.addf %218, %219 : vector<8x64xf32>
    %cst_125 = arith.constant 5.000000e-01 : f32
    %221 = vector.broadcast %cst_125 : f32 to vector<8x64xf32>
    %222 = arith.mulf %221, %220 : vector<8x64xf32>
    %223 = vector.extract_strided_slice %217 {offsets = [0, 64], sizes = [8, 64], strides = [1, 1]} : vector<8x256xf32> to vector<8x64xf32>
    %cst_126 = arith.constant 1.000000e+00 : f32
    %224 = vector.broadcast %cst_126 : f32 to vector<8x64xf32>
    %225 = arith.addf %223, %224 : vector<8x64xf32>
    %cst_127 = arith.constant 5.000000e-01 : f32
    %226 = vector.broadcast %cst_127 : f32 to vector<8x64xf32>
    %227 = arith.mulf %226, %225 : vector<8x64xf32>
    %228 = vector.extract_strided_slice %217 {offsets = [0, 128], sizes = [8, 64], strides = [1, 1]} : vector<8x256xf32> to vector<8x64xf32>
    %229 = vector.extract_strided_slice %217 {offsets = [0, 192], sizes = [8, 64], strides = [1, 1]} : vector<8x256xf32> to vector<8x64xf32>
    %cst_128 = arith.constant 1.000000e+00 : f32
    %230 = vector.broadcast %cst_128 : f32 to vector<8x64xf32>
    %231 = arith.addf %229, %230 : vector<8x64xf32>
    %cst_129 = arith.constant 5.000000e-01 : f32
    %232 = vector.broadcast %cst_129 : f32 to vector<8x64xf32>
    %233 = arith.mulf %232, %231 : vector<8x64xf32>
    %c0_130 = arith.constant 0 : index
    %c0_131 = arith.constant 0 : index
    %234 = vector.load %arg11[%c0_130, %c0_131] : memref<8x64xf32, #tpu.memory_space<vmem>>, vector<8x64xf32>
    %235 = arith.mulf %227, %234 : vector<8x64xf32>
    %236 = arith.mulf %222, %228 : vector<8x64xf32>
    %237 = arith.addf %235, %236 : vector<8x64xf32>
    %c0_132 = arith.constant 0 : index
    %c0_133 = arith.constant 0 : index
    %238 = vector.load %arg11[%c0_132, %c0_133] : memref<8x64xf32, #tpu.memory_space<vmem>>, vector<8x64xf32>
    tpu.vector_store %arg11[%c0_132, %c0_133], %237 {strides = array<i32>} : memref<8x64xf32, #tpu.memory_space<vmem>>, vector<8x64xf32>,
    %239 = math.tanh %237 : vector<8x64xf32>
    %240 = arith.mulf %233, %239 : vector<8x64xf32>
    %241 = arith.truncf %240 : vector<8x64xf32> to vector<8x64xbf16>
    %c0_134 = arith.constant 0 : index
    %c0_135 = arith.constant 0 : index
    %242 = vector.load %arg5[%c0_134, %c0_135] : memref<64x256xbf16, #tpu.memory_space<vmem>>, vector<64x256xbf16>
    %cst_136 = arith.constant dense<0.000000e+00> : vector<8x256xf32>
    %243 = tpu.matmul %241, %242, %cst_136 {dimension_numbers = #tpu.dot_dimension_numbers<[1], [0], [0], [1], [0, 0, 1, 1], [], []>} : vector<8x64xbf16>, vector<64x256xbf16>, vector<8x256xf32> -> vector<8x256xf32>
    %244 = arith.addf %211, %243 : vector<8x256xf32>
    %245 = math.tanh %244 : vector<8x256xf32>
    %246 = vector.extract_strided_slice %245 {offsets = [0, 0], sizes = [8, 64], strides = [1, 1]} : vector<8x256xf32> to vector<8x64xf32>
    %cst_137 = arith.constant 1.000000e+00 : f32
    %247 = vector.broadcast %cst_137 : f32 to vector<8x64xf32>
    %248 = arith.addf %246, %247 : vector<8x64xf32>
    %cst_138 = arith.constant 5.000000e-01 : f32
    %249 = vector.broadcast %cst_138 : f32 to vector<8x64xf32>
    %250 = arith.mulf %249, %248 : vector<8x64xf32>
    %251 = vector.extract_strided_slice %245 {offsets = [0, 64], sizes = [8, 64], strides = [1, 1]} : vector<8x256xf32> to vector<8x64xf32>
    %cst_139 = arith.constant 1.000000e+00 : f32
    %252 = vector.broadcast %cst_139 : f32 to vector<8x64xf32>
    %253 = arith.addf %251, %252 : vector<8x64xf32>
    %cst_140 = arith.constant 5.000000e-01 : f32
    %254 = vector.broadcast %cst_140 : f32 to vector<8x64xf32>
    %255 = arith.mulf %254, %253 : vector<8x64xf32>
    %256 = vector.extract_strided_slice %245 {offsets = [0, 128], sizes = [8, 64], strides = [1, 1]} : vector<8x256xf32> to vector<8x64xf32>
    %257 = vector.extract_strided_slice %245 {offsets = [0, 192], sizes = [8, 64], strides = [1, 1]} : vector<8x256xf32> to vector<8x64xf32>
    %cst_141 = arith.constant 1.000000e+00 : f32
    %258 = vector.broadcast %cst_141 : f32 to vector<8x64xf32>
    %259 = arith.addf %257, %258 : vector<8x64xf32>
    %cst_142 = arith.constant 5.000000e-01 : f32
    %260 = vector.broadcast %cst_142 : f32 to vector<8x64xf32>
    %261 = arith.mulf %260, %259 : vector<8x64xf32>
    %c0_143 = arith.constant 0 : index
    %c0_144 = arith.constant 0 : index
    %262 = vector.load %arg12[%c0_143, %c0_144] : memref<8x64xf32, #tpu.memory_space<vmem>>, vector<8x64xf32>
    %263 = arith.mulf %255, %262 : vector<8x64xf32>
    %264 = arith.mulf %250, %256 : vector<8x64xf32>
    %265 = arith.addf %263, %264 : vector<8x64xf32>
    %c0_145 = arith.constant 0 : index
    %c0_146 = arith.constant 0 : index
    %266 = vector.load %arg12[%c0_145, %c0_146] : memref<8x64xf32, #tpu.memory_space<vmem>>, vector<8x64xf32>
    tpu.vector_store %arg12[%c0_145, %c0_146], %265 {strides = array<i32>} : memref<8x64xf32, #tpu.memory_space<vmem>>, vector<8x64xf32>,
    %267 = math.tanh %265 : vector<8x64xf32>
    %268 = arith.mulf %261, %267 : vector<8x64xf32>
    %269 = arith.truncf %268 : vector<8x64xf32> to vector<8x64xbf16>
    %c0_147 = arith.constant 0 : index
    %c0_148 = arith.constant 0 : index
    %270 = vector.load %arg6[%c0_147, %c0_148] : memref<64x256xbf16, #tpu.memory_space<vmem>>, vector<64x256xbf16>
    %cst_149 = arith.constant dense<0.000000e+00> : vector<8x256xf32>
    %271 = tpu.matmul %269, %270, %cst_149 {dimension_numbers = #tpu.dot_dimension_numbers<[1], [0], [0], [1], [0, 0, 1, 1], [], []>} : vector<8x64xbf16>, vector<64x256xbf16>, vector<8x256xf32> -> vector<8x256xf32>
    %272 = vector.broadcast %15 : vector<1x256xf32> to vector<8x256xf32>
    %273 = arith.addf %271, %272 : vector<8x256xf32>
    %c4 = arith.constant 4 : index
    %c0_150 = arith.constant 0 : index
    %c0_151 = arith.constant 0 : index
    %274 = vector.load %arg10[%c4, %c0_150, %c0_151] : memref<8x8x256xf32, #tpu.memory_space<vmem>>, vector<1x8x256xf32>
    %275 = vector.shape_cast %274 : vector<1x8x256xf32> to vector<8x256xf32>
    %c0_152 = arith.constant 0 : index
    %c0_153 = arith.constant 0 : index
    %276 = vector.load %arg4[%c0_152, %c0_153] : memref<64x256xbf16, #tpu.memory_space<vmem>>, vector<64x256xbf16>
    %cst_154 = arith.constant dense<0.000000e+00> : vector<8x256xf32>
    %277 = tpu.matmul %241, %276, %cst_154 {dimension_numbers = #tpu.dot_dimension_numbers<[1], [0], [0], [1], [0, 0, 1, 1], [], []>} : vector<8x64xbf16>, vector<64x256xbf16>, vector<8x256xf32> -> vector<8x256xf32>
    %278 = arith.addf %275, %277 : vector<8x256xf32>
    %279 = math.tanh %278 : vector<8x256xf32>
    %280 = vector.extract_strided_slice %279 {offsets = [0, 0], sizes = [8, 64], strides = [1, 1]} : vector<8x256xf32> to vector<8x64xf32>
    %cst_155 = arith.constant 1.000000e+00 : f32
    %281 = vector.broadcast %cst_155 : f32 to vector<8x64xf32>
    %282 = arith.addf %280, %281 : vector<8x64xf32>
    %cst_156 = arith.constant 5.000000e-01 : f32
    %283 = vector.broadcast %cst_156 : f32 to vector<8x64xf32>
    %284 = arith.mulf %283, %282 : vector<8x64xf32>
    %285 = vector.extract_strided_slice %279 {offsets = [0, 64], sizes = [8, 64], strides = [1, 1]} : vector<8x256xf32> to vector<8x64xf32>
    %cst_157 = arith.constant 1.000000e+00 : f32
    %286 = vector.broadcast %cst_157 : f32 to vector<8x64xf32>
    %287 = arith.addf %285, %286 : vector<8x64xf32>
    %cst_158 = arith.constant 5.000000e-01 : f32
    %288 = vector.broadcast %cst_158 : f32 to vector<8x64xf32>
    %289 = arith.mulf %288, %287 : vector<8x64xf32>
    %290 = vector.extract_strided_slice %279 {offsets = [0, 128], sizes = [8, 64], strides = [1, 1]} : vector<8x256xf32> to vector<8x64xf32>
    %291 = vector.extract_strided_slice %279 {offsets = [0, 192], sizes = [8, 64], strides = [1, 1]} : vector<8x256xf32> to vector<8x64xf32>
    %cst_159 = arith.constant 1.000000e+00 : f32
    %292 = vector.broadcast %cst_159 : f32 to vector<8x64xf32>
    %293 = arith.addf %291, %292 : vector<8x64xf32>
    %cst_160 = arith.constant 5.000000e-01 : f32
    %294 = vector.broadcast %cst_160 : f32 to vector<8x64xf32>
    %295 = arith.mulf %294, %293 : vector<8x64xf32>
    %c0_161 = arith.constant 0 : index
    %c0_162 = arith.constant 0 : index
    %296 = vector.load %arg11[%c0_161, %c0_162] : memref<8x64xf32, #tpu.memory_space<vmem>>, vector<8x64xf32>
    %297 = arith.mulf %289, %296 : vector<8x64xf32>
    %298 = arith.mulf %284, %290 : vector<8x64xf32>
    %299 = arith.addf %297, %298 : vector<8x64xf32>
    %c0_163 = arith.constant 0 : index
    %c0_164 = arith.constant 0 : index
    %300 = vector.load %arg11[%c0_163, %c0_164] : memref<8x64xf32, #tpu.memory_space<vmem>>, vector<8x64xf32>
    tpu.vector_store %arg11[%c0_163, %c0_164], %299 {strides = array<i32>} : memref<8x64xf32, #tpu.memory_space<vmem>>, vector<8x64xf32>,
    %301 = math.tanh %299 : vector<8x64xf32>
    %302 = arith.mulf %295, %301 : vector<8x64xf32>
    %303 = arith.truncf %302 : vector<8x64xf32> to vector<8x64xbf16>
    %c0_165 = arith.constant 0 : index
    %c0_166 = arith.constant 0 : index
    %304 = vector.load %arg5[%c0_165, %c0_166] : memref<64x256xbf16, #tpu.memory_space<vmem>>, vector<64x256xbf16>
    %cst_167 = arith.constant dense<0.000000e+00> : vector<8x256xf32>
    %305 = tpu.matmul %303, %304, %cst_167 {dimension_numbers = #tpu.dot_dimension_numbers<[1], [0], [0], [1], [0, 0, 1, 1], [], []>} : vector<8x64xbf16>, vector<64x256xbf16>, vector<8x256xf32> -> vector<8x256xf32>
    %306 = arith.addf %273, %305 : vector<8x256xf32>
    %307 = math.tanh %306 : vector<8x256xf32>
    %308 = vector.extract_strided_slice %307 {offsets = [0, 0], sizes = [8, 64], strides = [1, 1]} : vector<8x256xf32> to vector<8x64xf32>
    %cst_168 = arith.constant 1.000000e+00 : f32
    %309 = vector.broadcast %cst_168 : f32 to vector<8x64xf32>
    %310 = arith.addf %308, %309 : vector<8x64xf32>
    %cst_169 = arith.constant 5.000000e-01 : f32
    %311 = vector.broadcast %cst_169 : f32 to vector<8x64xf32>
    %312 = arith.mulf %311, %310 : vector<8x64xf32>
    %313 = vector.extract_strided_slice %307 {offsets = [0, 64], sizes = [8, 64], strides = [1, 1]} : vector<8x256xf32> to vector<8x64xf32>
    %cst_170 = arith.constant 1.000000e+00 : f32
    %314 = vector.broadcast %cst_170 : f32 to vector<8x64xf32>
    %315 = arith.addf %313, %314 : vector<8x64xf32>
    %cst_171 = arith.constant 5.000000e-01 : f32
    %316 = vector.broadcast %cst_171 : f32 to vector<8x64xf32>
    %317 = arith.mulf %316, %315 : vector<8x64xf32>
    %318 = vector.extract_strided_slice %307 {offsets = [0, 128], sizes = [8, 64], strides = [1, 1]} : vector<8x256xf32> to vector<8x64xf32>
    %319 = vector.extract_strided_slice %307 {offsets = [0, 192], sizes = [8, 64], strides = [1, 1]} : vector<8x256xf32> to vector<8x64xf32>
    %cst_172 = arith.constant 1.000000e+00 : f32
    %320 = vector.broadcast %cst_172 : f32 to vector<8x64xf32>
    %321 = arith.addf %319, %320 : vector<8x64xf32>
    %cst_173 = arith.constant 5.000000e-01 : f32
    %322 = vector.broadcast %cst_173 : f32 to vector<8x64xf32>
    %323 = arith.mulf %322, %321 : vector<8x64xf32>
    %c0_174 = arith.constant 0 : index
    %c0_175 = arith.constant 0 : index
    %324 = vector.load %arg12[%c0_174, %c0_175] : memref<8x64xf32, #tpu.memory_space<vmem>>, vector<8x64xf32>
    %325 = arith.mulf %317, %324 : vector<8x64xf32>
    %326 = arith.mulf %312, %318 : vector<8x64xf32>
    %327 = arith.addf %325, %326 : vector<8x64xf32>
    %c0_176 = arith.constant 0 : index
    %c0_177 = arith.constant 0 : index
    %328 = vector.load %arg12[%c0_176, %c0_177] : memref<8x64xf32, #tpu.memory_space<vmem>>, vector<8x64xf32>
    tpu.vector_store %arg12[%c0_176, %c0_177], %327 {strides = array<i32>} : memref<8x64xf32, #tpu.memory_space<vmem>>, vector<8x64xf32>,
    %329 = math.tanh %327 : vector<8x64xf32>
    %330 = arith.mulf %323, %329 : vector<8x64xf32>
    %331 = arith.truncf %330 : vector<8x64xf32> to vector<8x64xbf16>
    %c0_178 = arith.constant 0 : index
    %c0_179 = arith.constant 0 : index
    %332 = vector.load %arg6[%c0_178, %c0_179] : memref<64x256xbf16, #tpu.memory_space<vmem>>, vector<64x256xbf16>
    %cst_180 = arith.constant dense<0.000000e+00> : vector<8x256xf32>
    %333 = tpu.matmul %331, %332, %cst_180 {dimension_numbers = #tpu.dot_dimension_numbers<[1], [0], [0], [1], [0, 0, 1, 1], [], []>} : vector<8x64xbf16>, vector<64x256xbf16>, vector<8x256xf32> -> vector<8x256xf32>
    %334 = vector.broadcast %15 : vector<1x256xf32> to vector<8x256xf32>
    %335 = arith.addf %333, %334 : vector<8x256xf32>
    %c5 = arith.constant 5 : index
    %c0_181 = arith.constant 0 : index
    %c0_182 = arith.constant 0 : index
    %336 = vector.load %arg10[%c5, %c0_181, %c0_182] : memref<8x8x256xf32, #tpu.memory_space<vmem>>, vector<1x8x256xf32>
    %337 = vector.shape_cast %336 : vector<1x8x256xf32> to vector<8x256xf32>
    %c0_183 = arith.constant 0 : index
    %c0_184 = arith.constant 0 : index
    %338 = vector.load %arg4[%c0_183, %c0_184] : memref<64x256xbf16, #tpu.memory_space<vmem>>, vector<64x256xbf16>
    %cst_185 = arith.constant dense<0.000000e+00> : vector<8x256xf32>
    %339 = tpu.matmul %303, %338, %cst_185 {dimension_numbers = #tpu.dot_dimension_numbers<[1], [0], [0], [1], [0, 0, 1, 1], [], []>} : vector<8x64xbf16>, vector<64x256xbf16>, vector<8x256xf32> -> vector<8x256xf32>
    %340 = arith.addf %337, %339 : vector<8x256xf32>
    %341 = math.tanh %340 : vector<8x256xf32>
    %342 = vector.extract_strided_slice %341 {offsets = [0, 0], sizes = [8, 64], strides = [1, 1]} : vector<8x256xf32> to vector<8x64xf32>
    %cst_186 = arith.constant 1.000000e+00 : f32
    %343 = vector.broadcast %cst_186 : f32 to vector<8x64xf32>
    %344 = arith.addf %342, %343 : vector<8x64xf32>
    %cst_187 = arith.constant 5.000000e-01 : f32
    %345 = vector.broadcast %cst_187 : f32 to vector<8x64xf32>
    %346 = arith.mulf %345, %344 : vector<8x64xf32>
    %347 = vector.extract_strided_slice %341 {offsets = [0, 64], sizes = [8, 64], strides = [1, 1]} : vector<8x256xf32> to vector<8x64xf32>
    %cst_188 = arith.constant 1.000000e+00 : f32
    %348 = vector.broadcast %cst_188 : f32 to vector<8x64xf32>
    %349 = arith.addf %347, %348 : vector<8x64xf32>
    %cst_189 = arith.constant 5.000000e-01 : f32
    %350 = vector.broadcast %cst_189 : f32 to vector<8x64xf32>
    %351 = arith.mulf %350, %349 : vector<8x64xf32>
    %352 = vector.extract_strided_slice %341 {offsets = [0, 128], sizes = [8, 64], strides = [1, 1]} : vector<8x256xf32> to vector<8x64xf32>
    %353 = vector.extract_strided_slice %341 {offsets = [0, 192], sizes = [8, 64], strides = [1, 1]} : vector<8x256xf32> to vector<8x64xf32>
    %cst_190 = arith.constant 1.000000e+00 : f32
    %354 = vector.broadcast %cst_190 : f32 to vector<8x64xf32>
    %355 = arith.addf %353, %354 : vector<8x64xf32>
    %cst_191 = arith.constant 5.000000e-01 : f32
    %356 = vector.broadcast %cst_191 : f32 to vector<8x64xf32>
    %357 = arith.mulf %356, %355 : vector<8x64xf32>
    %c0_192 = arith.constant 0 : index
    %c0_193 = arith.constant 0 : index
    %358 = vector.load %arg11[%c0_192, %c0_193] : memref<8x64xf32, #tpu.memory_space<vmem>>, vector<8x64xf32>
    %359 = arith.mulf %351, %358 : vector<8x64xf32>
    %360 = arith.mulf %346, %352 : vector<8x64xf32>
    %361 = arith.addf %359, %360 : vector<8x64xf32>
    %c0_194 = arith.constant 0 : index
    %c0_195 = arith.constant 0 : index
    %362 = vector.load %arg11[%c0_194, %c0_195] : memref<8x64xf32, #tpu.memory_space<vmem>>, vector<8x64xf32>
    tpu.vector_store %arg11[%c0_194, %c0_195], %361 {strides = array<i32>} : memref<8x64xf32, #tpu.memory_space<vmem>>, vector<8x64xf32>,
    %363 = math.tanh %361 : vector<8x64xf32>
    %364 = arith.mulf %357, %363 : vector<8x64xf32>
    %365 = arith.truncf %364 : vector<8x64xf32> to vector<8x64xbf16>
    %c0_196 = arith.constant 0 : index
    %c0_197 = arith.constant 0 : index
    %366 = vector.load %arg5[%c0_196, %c0_197] : memref<64x256xbf16, #tpu.memory_space<vmem>>, vector<64x256xbf16>
    %cst_198 = arith.constant dense<0.000000e+00> : vector<8x256xf32>
    %367 = tpu.matmul %365, %366, %cst_198 {dimension_numbers = #tpu.dot_dimension_numbers<[1], [0], [0], [1], [0, 0, 1, 1], [], []>} : vector<8x64xbf16>, vector<64x256xbf16>, vector<8x256xf32> -> vector<8x256xf32>
    %368 = arith.addf %335, %367 : vector<8x256xf32>
    %369 = math.tanh %368 : vector<8x256xf32>
    %370 = vector.extract_strided_slice %369 {offsets = [0, 0], sizes = [8, 64], strides = [1, 1]} : vector<8x256xf32> to vector<8x64xf32>
    %cst_199 = arith.constant 1.000000e+00 : f32
    %371 = vector.broadcast %cst_199 : f32 to vector<8x64xf32>
    %372 = arith.addf %370, %371 : vector<8x64xf32>
    %cst_200 = arith.constant 5.000000e-01 : f32
    %373 = vector.broadcast %cst_200 : f32 to vector<8x64xf32>
    %374 = arith.mulf %373, %372 : vector<8x64xf32>
    %375 = vector.extract_strided_slice %369 {offsets = [0, 64], sizes = [8, 64], strides = [1, 1]} : vector<8x256xf32> to vector<8x64xf32>
    %cst_201 = arith.constant 1.000000e+00 : f32
    %376 = vector.broadcast %cst_201 : f32 to vector<8x64xf32>
    %377 = arith.addf %375, %376 : vector<8x64xf32>
    %cst_202 = arith.constant 5.000000e-01 : f32
    %378 = vector.broadcast %cst_202 : f32 to vector<8x64xf32>
    %379 = arith.mulf %378, %377 : vector<8x64xf32>
    %380 = vector.extract_strided_slice %369 {offsets = [0, 128], sizes = [8, 64], strides = [1, 1]} : vector<8x256xf32> to vector<8x64xf32>
    %381 = vector.extract_strided_slice %369 {offsets = [0, 192], sizes = [8, 64], strides = [1, 1]} : vector<8x256xf32> to vector<8x64xf32>
    %cst_203 = arith.constant 1.000000e+00 : f32
    %382 = vector.broadcast %cst_203 : f32 to vector<8x64xf32>
    %383 = arith.addf %381, %382 : vector<8x64xf32>
    %cst_204 = arith.constant 5.000000e-01 : f32
    %384 = vector.broadcast %cst_204 : f32 to vector<8x64xf32>
    %385 = arith.mulf %384, %383 : vector<8x64xf32>
    %c0_205 = arith.constant 0 : index
    %c0_206 = arith.constant 0 : index
    %386 = vector.load %arg12[%c0_205, %c0_206] : memref<8x64xf32, #tpu.memory_space<vmem>>, vector<8x64xf32>
    %387 = arith.mulf %379, %386 : vector<8x64xf32>
    %388 = arith.mulf %374, %380 : vector<8x64xf32>
    %389 = arith.addf %387, %388 : vector<8x64xf32>
    %c0_207 = arith.constant 0 : index
    %c0_208 = arith.constant 0 : index
    %390 = vector.load %arg12[%c0_207, %c0_208] : memref<8x64xf32, #tpu.memory_space<vmem>>, vector<8x64xf32>
    tpu.vector_store %arg12[%c0_207, %c0_208], %389 {strides = array<i32>} : memref<8x64xf32, #tpu.memory_space<vmem>>, vector<8x64xf32>,
    %391 = math.tanh %389 : vector<8x64xf32>
    %392 = arith.mulf %385, %391 : vector<8x64xf32>
    %393 = arith.truncf %392 : vector<8x64xf32> to vector<8x64xbf16>
    %c0_209 = arith.constant 0 : index
    %c0_210 = arith.constant 0 : index
    %394 = vector.load %arg6[%c0_209, %c0_210] : memref<64x256xbf16, #tpu.memory_space<vmem>>, vector<64x256xbf16>
    %cst_211 = arith.constant dense<0.000000e+00> : vector<8x256xf32>
    %395 = tpu.matmul %393, %394, %cst_211 {dimension_numbers = #tpu.dot_dimension_numbers<[1], [0], [0], [1], [0, 0, 1, 1], [], []>} : vector<8x64xbf16>, vector<64x256xbf16>, vector<8x256xf32> -> vector<8x256xf32>
    %396 = vector.broadcast %15 : vector<1x256xf32> to vector<8x256xf32>
    %397 = arith.addf %395, %396 : vector<8x256xf32>
    %c6 = arith.constant 6 : index
    %c0_212 = arith.constant 0 : index
    %c0_213 = arith.constant 0 : index
    %398 = vector.load %arg10[%c6, %c0_212, %c0_213] : memref<8x8x256xf32, #tpu.memory_space<vmem>>, vector<1x8x256xf32>
    %399 = vector.shape_cast %398 : vector<1x8x256xf32> to vector<8x256xf32>
    %c0_214 = arith.constant 0 : index
    %c0_215 = arith.constant 0 : index
    %400 = vector.load %arg4[%c0_214, %c0_215] : memref<64x256xbf16, #tpu.memory_space<vmem>>, vector<64x256xbf16>
    %cst_216 = arith.constant dense<0.000000e+00> : vector<8x256xf32>
    %401 = tpu.matmul %365, %400, %cst_216 {dimension_numbers = #tpu.dot_dimension_numbers<[1], [0], [0], [1], [0, 0, 1, 1], [], []>} : vector<8x64xbf16>, vector<64x256xbf16>, vector<8x256xf32> -> vector<8x256xf32>
    %402 = arith.addf %399, %401 : vector<8x256xf32>
    %403 = math.tanh %402 : vector<8x256xf32>
    %404 = vector.extract_strided_slice %403 {offsets = [0, 0], sizes = [8, 64], strides = [1, 1]} : vector<8x256xf32> to vector<8x64xf32>
    %cst_217 = arith.constant 1.000000e+00 : f32
    %405 = vector.broadcast %cst_217 : f32 to vector<8x64xf32>
    %406 = arith.addf %404, %405 : vector<8x64xf32>
    %cst_218 = arith.constant 5.000000e-01 : f32
    %407 = vector.broadcast %cst_218 : f32 to vector<8x64xf32>
    %408 = arith.mulf %407, %406 : vector<8x64xf32>
    %409 = vector.extract_strided_slice %403 {offsets = [0, 64], sizes = [8, 64], strides = [1, 1]} : vector<8x256xf32> to vector<8x64xf32>
    %cst_219 = arith.constant 1.000000e+00 : f32
    %410 = vector.broadcast %cst_219 : f32 to vector<8x64xf32>
    %411 = arith.addf %409, %410 : vector<8x64xf32>
    %cst_220 = arith.constant 5.000000e-01 : f32
    %412 = vector.broadcast %cst_220 : f32 to vector<8x64xf32>
    %413 = arith.mulf %412, %411 : vector<8x64xf32>
    %414 = vector.extract_strided_slice %403 {offsets = [0, 128], sizes = [8, 64], strides = [1, 1]} : vector<8x256xf32> to vector<8x64xf32>
    %415 = vector.extract_strided_slice %403 {offsets = [0, 192], sizes = [8, 64], strides = [1, 1]} : vector<8x256xf32> to vector<8x64xf32>
    %cst_221 = arith.constant 1.000000e+00 : f32
    %416 = vector.broadcast %cst_221 : f32 to vector<8x64xf32>
    %417 = arith.addf %415, %416 : vector<8x64xf32>
    %cst_222 = arith.constant 5.000000e-01 : f32
    %418 = vector.broadcast %cst_222 : f32 to vector<8x64xf32>
    %419 = arith.mulf %418, %417 : vector<8x64xf32>
    %c0_223 = arith.constant 0 : index
    %c0_224 = arith.constant 0 : index
    %420 = vector.load %arg11[%c0_223, %c0_224] : memref<8x64xf32, #tpu.memory_space<vmem>>, vector<8x64xf32>
    %421 = arith.mulf %413, %420 : vector<8x64xf32>
    %422 = arith.mulf %408, %414 : vector<8x64xf32>
    %423 = arith.addf %421, %422 : vector<8x64xf32>
    %c0_225 = arith.constant 0 : index
    %c0_226 = arith.constant 0 : index
    %424 = vector.load %arg11[%c0_225, %c0_226] : memref<8x64xf32, #tpu.memory_space<vmem>>, vector<8x64xf32>
    tpu.vector_store %arg11[%c0_225, %c0_226], %423 {strides = array<i32>} : memref<8x64xf32, #tpu.memory_space<vmem>>, vector<8x64xf32>,
    %425 = math.tanh %423 : vector<8x64xf32>
    %426 = arith.mulf %419, %425 : vector<8x64xf32>
    %427 = arith.truncf %426 : vector<8x64xf32> to vector<8x64xbf16>
    %c0_227 = arith.constant 0 : index
    %c0_228 = arith.constant 0 : index
    %428 = vector.load %arg5[%c0_227, %c0_228] : memref<64x256xbf16, #tpu.memory_space<vmem>>, vector<64x256xbf16>
    %cst_229 = arith.constant dense<0.000000e+00> : vector<8x256xf32>
    %429 = tpu.matmul %427, %428, %cst_229 {dimension_numbers = #tpu.dot_dimension_numbers<[1], [0], [0], [1], [0, 0, 1, 1], [], []>} : vector<8x64xbf16>, vector<64x256xbf16>, vector<8x256xf32> -> vector<8x256xf32>
    %430 = arith.addf %397, %429 : vector<8x256xf32>
    %431 = math.tanh %430 : vector<8x256xf32>
    %432 = vector.extract_strided_slice %431 {offsets = [0, 0], sizes = [8, 64], strides = [1, 1]} : vector<8x256xf32> to vector<8x64xf32>
    %cst_230 = arith.constant 1.000000e+00 : f32
    %433 = vector.broadcast %cst_230 : f32 to vector<8x64xf32>
    %434 = arith.addf %432, %433 : vector<8x64xf32>
    %cst_231 = arith.constant 5.000000e-01 : f32
    %435 = vector.broadcast %cst_231 : f32 to vector<8x64xf32>
    %436 = arith.mulf %435, %434 : vector<8x64xf32>
    %437 = vector.extract_strided_slice %431 {offsets = [0, 64], sizes = [8, 64], strides = [1, 1]} : vector<8x256xf32> to vector<8x64xf32>
    %cst_232 = arith.constant 1.000000e+00 : f32
    %438 = vector.broadcast %cst_232 : f32 to vector<8x64xf32>
    %439 = arith.addf %437, %438 : vector<8x64xf32>
    %cst_233 = arith.constant 5.000000e-01 : f32
    %440 = vector.broadcast %cst_233 : f32 to vector<8x64xf32>
    %441 = arith.mulf %440, %439 : vector<8x64xf32>
    %442 = vector.extract_strided_slice %431 {offsets = [0, 128], sizes = [8, 64], strides = [1, 1]} : vector<8x256xf32> to vector<8x64xf32>
    %443 = vector.extract_strided_slice %431 {offsets = [0, 192], sizes = [8, 64], strides = [1, 1]} : vector<8x256xf32> to vector<8x64xf32>
    %cst_234 = arith.constant 1.000000e+00 : f32
    %444 = vector.broadcast %cst_234 : f32 to vector<8x64xf32>
    %445 = arith.addf %443, %444 : vector<8x64xf32>
    %cst_235 = arith.constant 5.000000e-01 : f32
    %446 = vector.broadcast %cst_235 : f32 to vector<8x64xf32>
    %447 = arith.mulf %446, %445 : vector<8x64xf32>
    %c0_236 = arith.constant 0 : index
    %c0_237 = arith.constant 0 : index
    %448 = vector.load %arg12[%c0_236, %c0_237] : memref<8x64xf32, #tpu.memory_space<vmem>>, vector<8x64xf32>
    %449 = arith.mulf %441, %448 : vector<8x64xf32>
    %450 = arith.mulf %436, %442 : vector<8x64xf32>
    %451 = arith.addf %449, %450 : vector<8x64xf32>
    %c0_238 = arith.constant 0 : index
    %c0_239 = arith.constant 0 : index
    %452 = vector.load %arg12[%c0_238, %c0_239] : memref<8x64xf32, #tpu.memory_space<vmem>>, vector<8x64xf32>
    tpu.vector_store %arg12[%c0_238, %c0_239], %451 {strides = array<i32>} : memref<8x64xf32, #tpu.memory_space<vmem>>, vector<8x64xf32>,
    %453 = math.tanh %451 : vector<8x64xf32>
    %454 = arith.mulf %447, %453 : vector<8x64xf32>
    %455 = arith.truncf %454 : vector<8x64xf32> to vector<8x64xbf16>
    %c0_240 = arith.constant 0 : index
    %c0_241 = arith.constant 0 : index
    %456 = vector.load %arg6[%c0_240, %c0_241] : memref<64x256xbf16, #tpu.memory_space<vmem>>, vector<64x256xbf16>
    %cst_242 = arith.constant dense<0.000000e+00> : vector<8x256xf32>
    %457 = tpu.matmul %455, %456, %cst_242 {dimension_numbers = #tpu.dot_dimension_numbers<[1], [0], [0], [1], [0, 0, 1, 1], [], []>} : vector<8x64xbf16>, vector<64x256xbf16>, vector<8x256xf32> -> vector<8x256xf32>
    %458 = vector.broadcast %15 : vector<1x256xf32> to vector<8x256xf32>
    %459 = arith.addf %457, %458 : vector<8x256xf32>
    %c7 = arith.constant 7 : index
    %c0_243 = arith.constant 0 : index
    %c0_244 = arith.constant 0 : index
    %460 = vector.load %arg10[%c7, %c0_243, %c0_244] : memref<8x8x256xf32, #tpu.memory_space<vmem>>, vector<1x8x256xf32>
    %461 = vector.shape_cast %460 : vector<1x8x256xf32> to vector<8x256xf32>
    %c0_245 = arith.constant 0 : index
    %c0_246 = arith.constant 0 : index
    %462 = vector.load %arg4[%c0_245, %c0_246] : memref<64x256xbf16, #tpu.memory_space<vmem>>, vector<64x256xbf16>
    %cst_247 = arith.constant dense<0.000000e+00> : vector<8x256xf32>
    %463 = tpu.matmul %427, %462, %cst_247 {dimension_numbers = #tpu.dot_dimension_numbers<[1], [0], [0], [1], [0, 0, 1, 1], [], []>} : vector<8x64xbf16>, vector<64x256xbf16>, vector<8x256xf32> -> vector<8x256xf32>
    %464 = arith.addf %461, %463 : vector<8x256xf32>
    %465 = math.tanh %464 : vector<8x256xf32>
    %466 = vector.extract_strided_slice %465 {offsets = [0, 0], sizes = [8, 64], strides = [1, 1]} : vector<8x256xf32> to vector<8x64xf32>
    %cst_248 = arith.constant 1.000000e+00 : f32
    %467 = vector.broadcast %cst_248 : f32 to vector<8x64xf32>
    %468 = arith.addf %466, %467 : vector<8x64xf32>
    %cst_249 = arith.constant 5.000000e-01 : f32
    %469 = vector.broadcast %cst_249 : f32 to vector<8x64xf32>
    %470 = arith.mulf %469, %468 : vector<8x64xf32>
    %471 = vector.extract_strided_slice %465 {offsets = [0, 64], sizes = [8, 64], strides = [1, 1]} : vector<8x256xf32> to vector<8x64xf32>
    %cst_250 = arith.constant 1.000000e+00 : f32
    %472 = vector.broadcast %cst_250 : f32 to vector<8x64xf32>
    %473 = arith.addf %471, %472 : vector<8x64xf32>
    %cst_251 = arith.constant 5.000000e-01 : f32
    %474 = vector.broadcast %cst_251 : f32 to vector<8x64xf32>
    %475 = arith.mulf %474, %473 : vector<8x64xf32>
    %476 = vector.extract_strided_slice %465 {offsets = [0, 128], sizes = [8, 64], strides = [1, 1]} : vector<8x256xf32> to vector<8x64xf32>
    %477 = vector.extract_strided_slice %465 {offsets = [0, 192], sizes = [8, 64], strides = [1, 1]} : vector<8x256xf32> to vector<8x64xf32>
    %cst_252 = arith.constant 1.000000e+00 : f32
    %478 = vector.broadcast %cst_252 : f32 to vector<8x64xf32>
    %479 = arith.addf %477, %478 : vector<8x64xf32>
    %cst_253 = arith.constant 5.000000e-01 : f32
    %480 = vector.broadcast %cst_253 : f32 to vector<8x64xf32>
    %481 = arith.mulf %480, %479 : vector<8x64xf32>
    %c0_254 = arith.constant 0 : index
    %c0_255 = arith.constant 0 : index
    %482 = vector.load %arg11[%c0_254, %c0_255] : memref<8x64xf32, #tpu.memory_space<vmem>>, vector<8x64xf32>
    %483 = arith.mulf %475, %482 : vector<8x64xf32>
    %484 = arith.mulf %470, %476 : vector<8x64xf32>
    %485 = arith.addf %483, %484 : vector<8x64xf32>
    %c0_256 = arith.constant 0 : index
    %c0_257 = arith.constant 0 : index
    %486 = vector.load %arg11[%c0_256, %c0_257] : memref<8x64xf32, #tpu.memory_space<vmem>>, vector<8x64xf32>
    tpu.vector_store %arg11[%c0_256, %c0_257], %485 {strides = array<i32>} : memref<8x64xf32, #tpu.memory_space<vmem>>, vector<8x64xf32>,
    %487 = math.tanh %485 : vector<8x64xf32>
    %488 = arith.mulf %481, %487 : vector<8x64xf32>
    %489 = arith.truncf %488 : vector<8x64xf32> to vector<8x64xbf16>
    %c0_258 = arith.constant 0 : index
    %c0_259 = arith.constant 0 : index
    %490 = vector.load %arg5[%c0_258, %c0_259] : memref<64x256xbf16, #tpu.memory_space<vmem>>, vector<64x256xbf16>
    %cst_260 = arith.constant dense<0.000000e+00> : vector<8x256xf32>
    %491 = tpu.matmul %489, %490, %cst_260 {dimension_numbers = #tpu.dot_dimension_numbers<[1], [0], [0], [1], [0, 0, 1, 1], [], []>} : vector<8x64xbf16>, vector<64x256xbf16>, vector<8x256xf32> -> vector<8x256xf32>
    %492 = arith.addf %459, %491 : vector<8x256xf32>
    %493 = math.tanh %492 : vector<8x256xf32>
    %494 = vector.extract_strided_slice %493 {offsets = [0, 0], sizes = [8, 64], strides = [1, 1]} : vector<8x256xf32> to vector<8x64xf32>
    %cst_261 = arith.constant 1.000000e+00 : f32
    %495 = vector.broadcast %cst_261 : f32 to vector<8x64xf32>
    %496 = arith.addf %494, %495 : vector<8x64xf32>
    %cst_262 = arith.constant 5.000000e-01 : f32
    %497 = vector.broadcast %cst_262 : f32 to vector<8x64xf32>
    %498 = arith.mulf %497, %496 : vector<8x64xf32>
    %499 = vector.extract_strided_slice %493 {offsets = [0, 64], sizes = [8, 64], strides = [1, 1]} : vector<8x256xf32> to vector<8x64xf32>
    %cst_263 = arith.constant 1.000000e+00 : f32
    %500 = vector.broadcast %cst_263 : f32 to vector<8x64xf32>
    %501 = arith.addf %499, %500 : vector<8x64xf32>
    %cst_264 = arith.constant 5.000000e-01 : f32
    %502 = vector.broadcast %cst_264 : f32 to vector<8x64xf32>
    %503 = arith.mulf %502, %501 : vector<8x64xf32>
    %504 = vector.extract_strided_slice %493 {offsets = [0, 128], sizes = [8, 64], strides = [1, 1]} : vector<8x256xf32> to vector<8x64xf32>
    %505 = vector.extract_strided_slice %493 {offsets = [0, 192], sizes = [8, 64], strides = [1, 1]} : vector<8x256xf32> to vector<8x64xf32>
    %cst_265 = arith.constant 1.000000e+00 : f32
    %506 = vector.broadcast %cst_265 : f32 to vector<8x64xf32>
    %507 = arith.addf %505, %506 : vector<8x64xf32>
    %cst_266 = arith.constant 5.000000e-01 : f32
    %508 = vector.broadcast %cst_266 : f32 to vector<8x64xf32>
    %509 = arith.mulf %508, %507 : vector<8x64xf32>
    %c0_267 = arith.constant 0 : index
    %c0_268 = arith.constant 0 : index
    %510 = vector.load %arg12[%c0_267, %c0_268] : memref<8x64xf32, #tpu.memory_space<vmem>>, vector<8x64xf32>
    %511 = arith.mulf %503, %510 : vector<8x64xf32>
    %512 = arith.mulf %498, %504 : vector<8x64xf32>
    %513 = arith.addf %511, %512 : vector<8x64xf32>
    %c0_269 = arith.constant 0 : index
    %c0_270 = arith.constant 0 : index
    %514 = vector.load %arg12[%c0_269, %c0_270] : memref<8x64xf32, #tpu.memory_space<vmem>>, vector<8x64xf32>
    tpu.vector_store %arg12[%c0_269, %c0_270], %513 {strides = array<i32>} : memref<8x64xf32, #tpu.memory_space<vmem>>, vector<8x64xf32>,
    %515 = math.tanh %513 : vector<8x64xf32>
    %516 = arith.mulf %509, %515 : vector<8x64xf32>
    %517 = arith.truncf %516 : vector<8x64xf32> to vector<8x64xbf16>
    %c0_271 = arith.constant 0 : index
    %c0_272 = arith.constant 0 : index
    %518 = vector.load %arg8[%c0_271, %c0_272] : memref<65x1xbf16, #tpu.memory_space<vmem>>, vector<64x1xbf16>
    %cst_273 = arith.constant dense<0.000000e+00> : vector<8x1xf32>
    %519 = tpu.matmul %517, %518, %cst_273 {dimension_numbers = #tpu.dot_dimension_numbers<[1], [0], [0], [1], [0, 0, 1, 1], [], []>} : vector<8x64xbf16>, vector<64x1xbf16>, vector<8x1xf32> -> vector<8x1xf32>
    %c64 = arith.constant 64 : index
    %c0_274 = arith.constant 0 : index
    %520 = vector.load %arg8[%c64, %c0_274] : memref<65x1xbf16, #tpu.memory_space<vmem>>, vector<1x1xbf16>
    %521 = arith.extf %520 : vector<1x1xbf16> to vector<1x1xf32>
    %522 = vector.broadcast %521 : vector<1x1xf32> to vector<8x1xf32>
    %523 = arith.addf %519, %522 : vector<8x1xf32>
    %c0_275 = arith.constant 0 : index
    %c0_276 = arith.constant 0 : index
    %524 = vector.load %arg9[%c0_275, %c0_276] : memref<8x1xf32, #tpu.memory_space<vmem>>, vector<8x1xf32>
    tpu.vector_store %arg9[%c0_275, %c0_276], %523 {strides = array<i32>} : memref<8x1xf32, #tpu.memory_space<vmem>>, vector<8x1xf32>,
    return
  }
  func.func @transform_0(%arg0: i32) -> (i32, i32, i32) {
    %c0_i32 = arith.constant 0 : i32
    %c0_i32_0 = arith.constant 0 : i32
    %c0_i32_1 = arith.constant 0 : i32
    return %c0_i32, %arg0, %c0_i32_0 : i32, i32, i32
  }
  func.func @transform_1(%arg0: i32) -> (i32, i32) {
    %c0_i32 = arith.constant 0 : i32
    %c0_i32_0 = arith.constant 0 : i32
    %c0_i32_1 = arith.constant 0 : i32
    return %c0_i32, %c0_i32_0 : i32, i32
  }
  func.func @transform_2(%arg0: i32) -> (i32, i32) {
    %c0_i32 = arith.constant 0 : i32
    %c0_i32_0 = arith.constant 0 : i32
    %c0_i32_1 = arith.constant 0 : i32
    return %c0_i32, %c0_i32_0 : i32, i32
  }
  func.func @transform_3(%arg0: i32) -> (i32, i32) {
    %c0_i32 = arith.constant 0 : i32
    %c0_i32_0 = arith.constant 0 : i32
    %c0_i32_1 = arith.constant 0 : i32
    return %c0_i32, %c0_i32_0 : i32, i32
  }
  func.func @transform_4(%arg0: i32) -> (i32, i32) {
    %c0_i32 = arith.constant 0 : i32
    %c0_i32_0 = arith.constant 0 : i32
    %c0_i32_1 = arith.constant 0 : i32
    return %c0_i32, %c0_i32_0 : i32, i32
  }
  func.func @transform_5(%arg0: i32) -> (i32, i32) {
    %c0_i32 = arith.constant 0 : i32
    %c0_i32_0 = arith.constant 0 : i32
    %c0_i32_1 = arith.constant 0 : i32
    return %c0_i32, %c0_i32_0 : i32, i32
  }
  func.func @transform_6(%arg0: i32) -> (i32, i32) {
    %c0_i32 = arith.constant 0 : i32
    %c0_i32_0 = arith.constant 0 : i32
    %c0_i32_1 = arith.constant 0 : i32
    return %c0_i32, %c0_i32_0 : i32, i32
  }
  func.func @transform_7(%arg0: i32) -> (i32, i32) {
    %c0_i32 = arith.constant 0 : i32
    %c0_i32_0 = arith.constant 0 : i32
    %c0_i32_1 = arith.constant 0 : i32
    return %c0_i32, %c0_i32_0 : i32, i32
  }
  func.func @transform_8(%arg0: i32) -> (i32, i32) {
    %c0_i32 = arith.constant 0 : i32
    %c0_i32_0 = arith.constant 0 : i32
    return %arg0, %c0_i32 : i32, i32
  }
}

</mosaic_0001>

<bundles_post_ra>
// kernel: tpu_custom_call.1
= control target key start
LH: loop header
LB: loop body
LE: loop exit
PB: predicated region body
PF: predicated region fallthrough
CT: control target
= control target key end

     0   :  { %13 = vsyncpa [#allocation6], 0  ;;  %s4499_s0 = inlined_call_operand.hbm [shape: bf16[8,8,25], index: 0, kind: input, shape index: {}]   ;;  %s4500_s1 = inlined_call_operand.hbm [shape: bf16[25,32], index: 1, kind: input, shape index: {}]   ;;  %s4501_s2 = inlined_call_operand.vmem [shape: bf16[33,256], index: 2, kind: input, shape index: {}]   ;;  %s4502_s3 = inlined_call_operand.hbm [shape: bf16[64,256], index: 3, kind: input, shape index: {}]   ;;  %s4503_s4 = inlined_call_operand.hbm [shape: bf16[64,256], index: 4, kind: input, shape index: {}]   ;;  %s4504_s5 = inlined_call_operand.hbm [shape: bf16[64,256], index: 5, kind: input, shape index: {}]   ;;  %s4505_s6 = inlined_call_operand.vmem [shape: f32[1,256], index: 6, kind: input, shape index: {}]   ;;  %s4506_s7 = inlined_call_operand.vmem [shape: bf16[65,1], index: 7, kind: input, shape index: {}]   ;;  %s4507_s8 = inlined_call_operand.vmem [shape: f32[8,1], index: 8, kind: output, shape index: {}]  }
   0x1   :  { %14 = vsyncpa [#allocation8], 0 }
   0x2   :  { %15 = vsyncpa [#allocation11], 0  ;;  %s3816_s27 = smov [#allocation7]   ;;  %s3700_s9 = scalar_lea.hbm %s4500_s1, 256 }
   0x3   :  { %s33_s28 = sshll.u32 %s3816_s27, 4  ;;  %p3701_p0 = scmp.ne.s32.totalorder %s4500_s1, %s3700_s9  ;;  %s34_s28 = int_to_ptr.vmem [resolvable:$true] %s33_s28 }
   0x4   :  { %p3704_p1 = scmp.lt.u32.totalorder %s3700_s9, %s4500_s1 }
   0x6   :  { %p3706_p2 = pnand %p3704_p1, %p3701_p0 }
   0x8   :  { %3709 = shalt.err (!%p3706_p2)
}
   0x9   :  { %s3710_s14 = scalar_lea.vmem %s34_s28, 256  ;;  %p3715_p4 = scmp.lt.s32.totalorder %s34_s28, %s34_s28 }
   0xa   :  { %p3711_p3 = scmp.ne.s32.totalorder %s34_s28, %s3710_s14  ;;  %p3716_p5 = scmp.lt.s32.totalorder %s3710_s14, %s3710_s14 }
   0xc   :  { %p3717_p6 = por %p3716_p5, %p3715_p4 }
   0xe   :  { %p3718_p7 = pnand %p3717_p6, %p3711_p3 }
  0x10   :  { %3721 = shalt.err (!%p3718_p7)
}
  0x11   :  { %s3817_s15 = smov 64   ;;  %s3818_s16 = smov 4  }
  0x12   :  { %39 = dma.hbm_to_vmem [thread:$0]  %s4500_s1, 256, %s34_s28, [#allocation8], %s3817_s15, %s3817_s15, %s3818_s16  }
  0x13   :  { %s3819_s19 = smov [#allocation10]   ;;  %s3820_s21 = smov [#allocation5]  }
  0x14   :  { %s59_s20 = sshll.u32 %s3819_s19, 4  ;;  %s21_s22 = sshll.u32 %s3820_s21, 4  ;;  %s60_s20 = int_to_ptr.vmem [resolvable:$true] %s59_s20  ;;  %s22_s22 = int_to_ptr.vmem [resolvable:$true] %s21_s22 }
  0x15   :  { %s3722_s25 = scalar_lea.hbm %s4503_s4, 1024 }
  0x16   :  { %p3723_p8 = scmp.ne.s32.totalorder %s4503_s4, %s3722_s25  ;;  %p3726_p9 = scmp.lt.u32.totalorder %s3722_s25, %s4503_s4 }
  0x18   :  { %p3728_p10 = pnand %p3726_p9, %p3723_p8 }
  0x1a   :  { %3731 = shalt.err (!%p3728_p10)
}
  0x1b   :  { %s3732_s1 = scalar_lea.vmem %s60_s20, 1024  ;;  %p3737_p12 = scmp.lt.s32.totalorder %s60_s20, %s60_s20 }
  0x1c   :  { %p3733_p11 = scmp.ne.s32.totalorder %s60_s20, %s3732_s1  ;;  %p3738_p13 = scmp.lt.s32.totalorder %s3732_s1, %s3732_s1 }
  0x1e   :  { %p3739_p0 = por %p3738_p13, %p3737_p12 }
  0x20   :  { %p3740_p1 = pnand %p3739_p0, %p3733_p11 }
  0x22   :  { %3743 = shalt.err (!%p3740_p1)
}
  0x23   :  { %s3821_s28 = smov 128   ;;  %s3822_s9 = smov 8  }
  0x24   :  { %65 = dma.hbm_to_vmem [thread:$0]  %s4503_s4, 1024, %s60_s20, [#allocation11], %s3821_s28, %s3821_s28, %s3822_s9  }
  0x25   :  { %s3744_s14 = scalar_lea.hbm %s4499_s0, 512 }
  0x26   :  { %p3745_p2 = scmp.ne.s32.totalorder %s4499_s0, %s3744_s14  ;;  %p3748_p3 = scmp.lt.u32.totalorder %s3744_s14, %s4499_s0 }
  0x28   :  { %p3750_p4 = pnand %p3748_p3, %p3745_p2 }
  0x2a   :  { %3753 = shalt.err (!%p3750_p4)
}
  0x2b   :  { %s3754_s23 = scalar_lea.vmem %s22_s22, 512  ;;  %p3759_p6 = scmp.lt.s32.totalorder %s22_s22, %s22_s22 }
  0x2c   :  { %p3755_p5 = scmp.ne.s32.totalorder %s22_s22, %s3754_s23  ;;  %p3760_p7 = scmp.lt.s32.totalorder %s3754_s23, %s3754_s23 }
  0x2e   :  { %p3761_p8 = por %p3760_p7, %p3759_p6 }
  0x30   :  { %p3762_p9 = pnand %p3761_p8, %p3755_p5 }
  0x32   :  { %3765 = shalt.err (!%p3762_p9)
}
  0x33   :  { %27 = dma.hbm_to_vmem [thread:$0]  %s4499_s0, 512, %s22_s22, [#allocation6], %s3817_s15, %s3817_s15, %s3818_s16  }
  0x34   :  { %s3823_s24 = smov [#allocation9]   ;;  %s3824_s26 = smov [#allocation12]  }
  0x35   :  { %s47_s25 = sshll.u32 %s3823_s24, 4  ;;  %s71_s27 = sshll.u32 %s3824_s26, 4  ;;  %s48_s25 = int_to_ptr.vmem [resolvable:$true] %s47_s25  ;;  %s72_s27 = int_to_ptr.vmem [resolvable:$true] %s71_s27 }
  0x36   :  { %s3766_s1 = scalar_lea.hbm %s4502_s3, 1024 }
  0x37   :  { %p3767_p10 = scmp.ne.s32.totalorder %s4502_s3, %s3766_s1  ;;  %p3770_p11 = scmp.lt.u32.totalorder %s3766_s1, %s4502_s3 }
  0x39   :  { %p3772_p12 = pnand %p3770_p11, %p3767_p10 }
  0x3b   :  { %3775 = shalt.err (!%p3772_p12)
}
  0x3c   :  { %s3776_s0 = scalar_lea.vmem %s48_s25, 1024  ;;  %p3781_p0 = scmp.lt.s32.totalorder %s48_s25, %s48_s25 }
  0x3d   :  { %p3777_p13 = scmp.ne.s32.totalorder %s48_s25, %s3776_s0  ;;  %p3782_p1 = scmp.lt.s32.totalorder %s3776_s0, %s3776_s0 }
  0x3f   :  { %p3783_p2 = por %p3782_p1, %p3781_p0 }
  0x41   :  { %p3784_p3 = pnand %p3783_p2, %p3777_p13 }
  0x43   :  { %3787 = shalt.err (!%p3784_p3)
}
  0x44   :  { %53 = dma.hbm_to_vmem [thread:$0]  %s4502_s3, 1024, %s48_s25, [#allocation8], %s3821_s28, %s3821_s28, %s3822_s9  }
  0x45   :  { %s3788_s18 = scalar_lea.hbm %s4504_s5, 1024 }
  0x46   :  { %p3789_p4 = scmp.ne.s32.totalorder %s4504_s5, %s3788_s18  ;;  %p3792_p5 = scmp.lt.u32.totalorder %s3788_s18, %s4504_s5 }
  0x48   :  { %p3794_p6 = pnand %p3792_p5, %p3789_p4 }
  0x4a   :  { %3797 = shalt.err (!%p3794_p6)
}
  0x4b   :  { %s3798_s20 = scalar_lea.vmem %s72_s27, 1024  ;;  %p3803_p8 = scmp.lt.s32.totalorder %s72_s27, %s72_s27 }
  0x4c   :  { %p3799_p7 = scmp.ne.s32.totalorder %s72_s27, %s3798_s20  ;;  %p3804_p9 = scmp.lt.s32.totalorder %s3798_s20, %s3798_s20 }
  0x4e   :  { %p3805_p10 = por %p3804_p9, %p3803_p8 }
  0x50   :  { %p3806_p11 = pnand %p3805_p10, %p3799_p7 }
  0x52   :  { %3809 = shalt.err (!%p3806_p11)
}
  0x53   :  { %77 = dma.hbm_to_vmem [thread:$0]  %s4504_s5, 1024, %s72_s27, [#allocation11], %s3821_s28, %s3821_s28, %s3822_s9  }
  0x54   :  { %3810 = dma.done.wait [#allocation6], 512  }
  0x55   :  { %3811 = vsyncadd [#allocation6], 4294966784 }
  0x56   :  { %3812 = dma.done.wait [#allocation8], 1280  }
  0x57   :  { %3813 = vsyncadd [#allocation8], 4294966016 }
  0x58   :  { %3814 = dma.done.wait [#allocation11], 2048  }
  0x59   :  { %3815 = vsyncadd [#allocation11], 4294965248  ;;  %vm154_vm0 = vcmask 1043456   ;;  %v3825_v0 = vmov 0   ;;  %vm155_vm1 = vcmask 1044480   ;;  %v3826_v1 = vmov 65535  }
  0x5a   :  { %318 = vmatprep.mubr.bf16.mxu1 %v3825_v0  ;;  %v156_v2 = vsel %vm154_vm0, 4294967295, %v3826_v1  ;;  %vm141_vm2 = vcmask 203776   ;;  %v3516_v3 = vld [vmem:[#allocation7] sm:$0xff]   ;;  %v3517_v5 = vld [vmem:[#allocation7 + $0x8] sm:$0x1f]   ;;  %v3520_v9 = vld [vmem:[#allocation5 + $0x10] sm:$0xff]   ;;  %v245_v57 = vlaneseq }
  0x5b   :  { %v157_v4 = vsel %vm155_vm1, %v156_v2, 0  ;;  %3431 = vmatprep.subr.bf16.mxu0 %v3516_v3  ;;  %v3518_v6 = vld [vmem:[#allocation5] sm:$0xff]   ;;  %v3519_v8 = vld [vmem:[#allocation5 + $0x8] sm:$0xff]   ;;  %v3951_v10 = vld [vmem:[#allocation12] ss:$8 sps:$4 sm:$0xff]   ;;  %vm376_vm3 = vcmask 523264  }
  0x5c   :  { %3432 = vmatpush3.bf16.msra.mxu0 %v3516_v3  ;;  %v159_v7 = vand.u32 %v3517_v5, %v157_v4  ;;  %3435 = vmatprep.mubr.msk.bf16.mxu0 %vm141_vm2, %v3518_v6  ;;  %v3953_v11 = vld [vmem:[#allocation12 + $0x4] ss:$8 sps:$4 sm:$0xff]   ;;  %v3955_v12 = vld [vmem:[#allocation12 + $0x14] ss:$8 sps:$4 sm:$0xff]   ;;  %v3961_v13 = vld [vmem:[#allocation12 + $0x10] ss:$8 sps:$4 sm:$0xff]  }
  0x5d   :  { %v3964_v14 = vld [vmem:[#allocation12 + $0x24] ss:$8 sps:$4 sm:$0xff]   ;;  %v3966_v16 = vld [vmem:[#allocation12 + $0x20] ss:$8 sps:$4 sm:$0xff]   ;;  %v3969_v17 = vld [vmem:[#allocation12 + $0x34] ss:$8 sps:$4 sm:$0xff]  }
  0x5e   :  { %3433 = vmatprep.subr.bf16.mxu0 %v159_v7  ;;  %v3521_v15 = vld [vmem:[#allocation5 + $0x18] sm:$0xff]   ;;  %v3972_v18 = vld [vmem:[#allocation12 + $0x30] ss:$8 sps:$4 sm:$0xff]   ;;  %v3982_v21 = vld [vmem:[#allocation9 + $0x14] ss:$8 sps:$4 sm:$0xff]   ;;  %v3827_v31 = vmov 0.0  }
  0x5f   :  { %v3975_v19 = vld [vmem:[#allocation9 + $0x4] ss:$8 sps:$4 sm:$0xff]   ;;  %v3980_v20 = vld [vmem:[#allocation9] ss:$8 sps:$4 sm:$0xff]   ;;  %v3986_v22 = vld [vmem:[#allocation9 + $0x10] ss:$8 sps:$4 sm:$0xff]  }
  0x60   :  { %3434 = vmatpush3.bf16.msra.mxu0 %v159_v7  ;;  %v3989_v23 = vld [vmem:[#allocation9 + $0x24] ss:$8 sps:$4 sm:$0xff]   ;;  %v3995_v24 = vld [vmem:[#allocation9 + $0x20] ss:$8 sps:$4 sm:$0xff]   ;;  %v4005_v27 = vld [vmem:[#allocation9 + $0x34] ss:$8 sps:$4 sm:$0xff]  }
  0x61   :  { %441 = vmatprep.subr.bf16.mxu0 %v3953_v11  ;;  %v3543_v25 = vld [vmem:[%s4501_s2 + $0x4] ss:$8 sps:$4 sm:$0xff]   ;;  %v3545_v26 = vld [vmem:[%s4501_s2] ss:$8 sps:$4 sm:$0xff]   ;;  %v4007_v28 = vld [vmem:[#allocation9 + $0x30] ss:$8 sps:$4 sm:$0xff]  }
  0x62   :  { %286 = vmatprep.subr.bf16.mxu1 %v3543_v25  ;;  %v3549_v29 = vld [vmem:[%s4501_s2 + $0x14] ss:$8 sps:$4 sm:$0xff]   ;;  %v3551_v30 = vld [vmem:[%s4501_s2 + $0x10] ss:$8 sps:$4 sm:$0xff]   ;;  %377 = vst.msk [vmem:[#allocation3] sm:$0xff] %vm376_vm3, %v3827_v31  ;;  %378 = vst.msk [vmem:[#allocation4] sm:$0xff] %vm376_vm3, %v3827_v31 }
  0x63   :  { %3436 = vmatmul.mubr.msk.bf16.vlgmr.msra.gmra.mrb[0].mxu0 %vm141_vm2, %v3519_v8  ;;  %287 = vmatpush1.bf16.msra.mxu1 %v3545_v26  ;;  %vm273_vm4 = vcmask 261120   ;;  %v4041_v58 = vshrl.u32 %v245_v57, 7  ;;  %v242_v59 = vld [vmem:[%s4501_s2 + $0x20] sm:$0x11]  ;;  %vm3828_vm5 = vmmov 0   ;;  %vm3174_vm6 = vcmask 7168  }
  0x64   :  { %3439 = vmatprep.mubr.msk.bf16.mxu0 %vm141_vm2, %v3520_v9  ;;  %442 = vmatpush1.bf16.msra.mxu0 %v3951_v10  ;;  %v243_v60 = vunpack.c.l.bf16 %v242_v59  ;;  %v244_v62 = vunpack.c.h.bf16 %v242_v59 }
  0x65   :  { %443 = vmatprep.subr.bf16.mxu0 %v3955_v12  ;;  %288 = vmatprep.subr.bf16.mxu1 %v3549_v29  ;;  %v4047_v61 = vsub.s32 0, %v4041_v58 }
  0x67   :  { %289 = vmatpush1.bf16.msra.mxu1 %v3551_v30  ;;  %v248_v63 = vrot.slane %v243_v60, %v4047_v61  ;;  %v252_v1 = vrot.slane %v244_v62, %v4047_v61 }
  0x68   :  { %444 = vmatpush1.bf16.msra.mxu0 %v3961_v13  ;;  %778 = vmatprep.subr.bf16.mxu1 %v3953_v11 }
  0x69   :  { %445 = vmatprep.subr.bf16.mxu0 %v3964_v14  ;;  %v581_v32 = vld [vmem:[#allocation3] sm:$0xff] }
  0x6a   :  { %583 = vrot.lane.b32.xlu0 %v581_v32, %s3817_s15 }
  0x6b   :  { %3440 = vmatmul.mubr.msk.bf16.gmra.mrb[4].mxu0 %vm141_vm2, %v3521_v15 }
  0x6c   :  { %446 = vmatpush1.bf16.msra.mxu0 %v3966_v16  ;;  %473 = vmatprep.mubr.bf16.mxu0 %v3825_v0 }
  0x6d   :  { %447 = vmatprep.subr.bf16.mxu0 %v3969_v17 }
  0x70   :  { %448 = vmatpush1.bf16.msra.mxu0 %v3972_v18 }
  0x71   :  { %532 = vmatprep.subr.bf16.mxu0 %v3975_v19 }
  0x73   :  { %474 = vmatmul.mubr.bf16.vlgmr.msra.gmra.mrb[8].mxu0 %v3825_v0 }
  0x74   :  { %533 = vmatpush1.bf16.msra.mxu0 %v3980_v20  ;;  %564 = vmatprep.mubr.bf16.mxu0 %v3825_v0 }
  0x75   :  { %534 = vmatprep.subr.bf16.mxu0 %v3982_v21 }
  0x78   :  { %535 = vmatpush1.bf16.msra.mxu0 %v3986_v22 }
  0x79   :  { %536 = vmatprep.subr.bf16.mxu0 %v3989_v23 }
  0x7c   :  { %537 = vmatpush1.bf16.msra.mxu0 %v3995_v24 }
  0x7d   :  { %538 = vmatprep.subr.bf16.mxu0 %v4005_v27 }
  0x80   :  { %539 = vmatpush1.bf16.msra.mxu0 %v4007_v28 }
  0x83   :  { %565 = vmatmul.mubr.bf16.vlgmr.msra.gmra.mrb[12].mxu0 %v3825_v0 }
  0x84   :  { %687 = vmatprep.mubr.bf16.mxu0 %v3825_v0 }
 0x136   :  { %v3437_v33 = vpop.f32.mrb[0].mxu0 }
 0x137   :  { %v195_v34 = vpop.f32.mrb[1].mxu0  ;;  %v228_v36 = vmax.f32 %v3437_v33, 0.0 }
 0x138   :  { %v3438_v35 = vpop.f32.mrb[2].mxu0  ;;  %v226_v39 = vmax.f32 %v195_v34, 0.0 }
 0x139   :  { %v229_v37 = vmax.f32 %v3438_v35, 0.0  ;;  %v198_v38 = vpop.f32.mrb[3].mxu0 }
 0x13a   :  { %v227_v40 = vmax.f32 %v198_v38, 0.0 }
 0x13b   :  { %v235_v41 = vpack.c.bf16 %v229_v37, %v228_v36 }
 0x13c   :  { %v234_v42 = vpack.c.bf16 %v227_v40, %v226_v39 }
 0x13e   :  { %3197 = vmatmul.mubr.msk.bf16.vlgmr.msra.gmra.mrb[0].mxu1 %vm273_vm4, %v234_v42  ;;  %v3441_v43 = vpop.f32.mrb[4].mxu0 }
 0x13f   :  { %328 = vmatprep.mubr.bf16.mxu1 %v3825_v0  ;;  %v232_v44 = vmax.f32 %v3441_v43, 0.0  ;;  %v211_v45 = vpop.f32.mrb[5].mxu0  ;;  %779 = vmatpush1.bf16.msra.mxu1 %v3951_v10  ;;  %v4064_v43 = vld [vmem:[#allocation10] ss:$8 sps:$4 sm:$0xff]  }
 0x140   :  { %v230_v46 = vmax.f32 %v211_v45, 0.0  ;;  %v3442_v47 = vpop.f32.mrb[6].mxu0  ;;  %780 = vmatprep.subr.bf16.mxu1 %v3955_v12 }
 0x141   :  { %v233_v48 = vmax.f32 %v3442_v47, 0.0  ;;  %v214_v49 = vpop.f32.mrb[7].mxu0  ;;  %v4070_v47 = vld [vmem:[#allocation10 + $0x14] ss:$8 sps:$4 sm:$0xff]  }
 0x142   :  { %v231_v50 = vmax.f32 %v214_v49, 0.0 }
 0x143   :  { %v237_v51 = vpack.c.bf16 %v233_v48, %v232_v44  ;;  %781 = vmatpush1.bf16.msra.mxu1 %v3961_v13  ;;  %v4066_v44 = vld [vmem:[#allocation10 + $0x4] ss:$8 sps:$4 sm:$0xff]  }
 0x144   :  { %v236_v52 = vpack.c.bf16 %v231_v50, %v230_v46  ;;  %782 = vmatprep.subr.bf16.mxu1 %v3964_v14  ;;  %655 = vmatprep.subr.bf16.mxu0 %v4066_v44 }
 0x145   :  { %656 = vmatpush1.bf16.msra.mxu0 %v4064_v43 }
 0x146   :  { %3198 = vmatmul.mubr.msk.bf16.gmra.mrb[4].mxu1 %vm273_vm4, %v235_v41  ;;  %657 = vmatprep.subr.bf16.mxu0 %v4070_v47 }
 0x147   :  { %338 = vmatprep.mubr.bf16.mxu1 %v3825_v0  ;;  %783 = vmatpush1.bf16.msra.mxu1 %v3966_v16 }
 0x148   :  { %784 = vmatprep.subr.bf16.mxu1 %v3969_v17 }
 0x14b   :  { %785 = vmatpush1.bf16.msra.mxu1 %v3972_v18 }
 0x14c   :  { %870 = vmatprep.subr.bf16.mxu1 %v3975_v19 }
 0x14e   :  { %3199 = vmatmul.mubr.msk.bf16.gmra.mrb[8].mxu1 %vm273_vm4, %v236_v52  ;;  %v4078_v52 = vld [vmem:[#allocation10 + $0x10] ss:$8 sps:$4 sm:$0xff]  }
 0x14f   :  { %348 = vmatprep.mubr.bf16.mxu1 %v3825_v0  ;;  %658 = vmatpush1.bf16.msra.mxu0 %v4078_v52 }
 0x156   :  { %3200 = vmatmul.mubr.msk.bf16.gmra.mrb[12].mxu1 %vm273_vm4, %v237_v51  ;;  %v566_v53 = vpop.f32.mrb[12].mxu0 }
 0x157   :  { %810 = vmatprep.mubr.bf16.mxu1 %v3825_v0  ;;  %v568_v54 = vpop.f32.mrb[13].mxu0 }
 0x158   :  { %v570_v55 = vpop.f32.mrb[14].mxu0 }
 0x159   :  { %v571_v56 = vpop.f32.mrb[15].mxu0  ;;  %v4083_v55 = vld [vmem:[#allocation10 + $0x24] ss:$8 sps:$4 sm:$0xff]  }
 0x15a   :  { %659 = vmatprep.subr.bf16.mxu0 %v4083_v55 }
 0x211   :  { %v320_v2 = vpop.f32.mrb[0].mxu1 }
 0x212   :  { %v321_v3 = vadd.f32 %v320_v2, %v248_v63  ;;  %v322_v4 = vpop.f32.mrb[1].mxu1 }
 0x213   :  { %v323_v5 = vadd.f32 %v322_v4, %v252_v1  ;;  %v324_v6 = vpop.f32.mrb[2].mxu1 }
 0x214   :  { %v573_v7 = vadd.f32 %v566_v53, %v321_v3  ;;  %v4051_v8 = vadd.f32 %v324_v6, %v248_v63  ;;  %v326_v9 = vpop.f32.mrb[3].mxu1  ;;  %v4092_v3 = vld [vmem:[#allocation10 + $0x20] ss:$8 sps:$4 sm:$0xff]   ;;  %v4100_v6 = vld [vmem:[#allocation10 + $0x30] ss:$8 sps:$4 sm:$0xff]  }
 0x215   :  { %v574_v15 = vadd.f32 %v568_v54, %v323_v5  ;;  %v4053_v25 = vadd.f32 %v326_v9, %v252_v1  ;;  %v4097_v5 = vld [vmem:[#allocation10 + $0x34] ss:$8 sps:$4 sm:$0xff]   ;;  %660 = vmatpush1.bf16.msra.mxu0 %v4092_v3 }
 0x216   :  { %3604 = vtanh.f32 %v573_v7  ;;  %661 = vmatprep.subr.bf16.mxu0 %v4097_v5 }
 0x217   :  { %3606 = vtanh.f32 %v574_v15 }
 0x219   :  { %v330_v26 = vpop.f32.mrb[4].mxu1  ;;  %662 = vmatpush1.bf16.msra.mxu0 %v4100_v6 }
 0x21a   :  { %v4055_v29 = vadd.f32 %v330_v26, %v248_v63  ;;  %v332_v30 = vpop.f32.mrb[5].mxu1  ;;  %1116 = vmatprep.subr.bf16.mxu0 %v3953_v11 }
 0x21b   :  { %v4057_v32 = vadd.f32 %v332_v30, %v252_v1  ;;  %v334_v33 = vpop.f32.mrb[6].mxu1 }
 0x21c   :  { %v4059_v34 = vadd.f32 %v334_v33, %v248_v63  ;;  %v336_v35 = vpop.f32.mrb[7].mxu1 }
 0x21d   :  { %v4061_v36 = vadd.f32 %v336_v35, %v252_v1 }
 0x220   :  { %v3605_v37 = vpop.eup %3604 }
 0x221   :  { %v577_v38 = vadd.f32 1.0, %v3605_v37  ;;  %v3607_v40 = vpop.eup %3606  ;;  %v340_v42 = vpop.f32.mrb[8].mxu1  ;;  %v704_v37 = vld [vmem:[#allocation4] sm:$0xff] }
 0x222   :  { %v4068_v45 = vadd.f32 %v340_v42, %v248_v63  ;;  %v342_v46 = vpop.f32.mrb[9].mxu1 }
 0x223   :  { %v578_v39 = vmul.f32 0.5, %v577_v38  ;;  %v4072_v48 = vadd.f32 %v342_v46, %v252_v1  ;;  %v344_v49 = vpop.f32.mrb[10].mxu1 }
 0x224   :  { %v4075_v50 = vadd.f32 %v344_v49, %v248_v63  ;;  %v346_v51 = vpop.f32.mrb[11].mxu1 }
 0x225   :  { %v587_v41 = vmul.f32 %v3607_v40, %v578_v39  ;;  %v4080_v53 = vadd.f32 %v346_v51, %v252_v1 }
 0x227   :  { %589 = vrot.lane.b32.xlu0 %v587_v41, %s3817_s15 }
 0x229   :  { %v350_v54 = vpop.f32.mrb[12].mxu1 }
 0x22a   :  { %v4085_v56 = vadd.f32 %v350_v54, %v248_v63  ;;  %v352_v57 = vpop.f32.mrb[13].mxu1 }
 0x22b   :  { %v4087_v59 = vadd.f32 %v352_v57, %v252_v1  ;;  %v354_v60 = vpop.f32.mrb[14].mxu1 }
 0x22c   :  { %v4089_v62 = vadd.f32 %v354_v60, %v248_v63  ;;  %v356_v2 = vpop.f32.mrb[15].mxu1  ;;  %v584_v63 = vpop.permute.xlu0 %583 }
 0x22d   :  { %v4094_v4 = vadd.f32 %v356_v2, %v252_v1  ;;  %v586_v7 = vmul.f32 %v584_v63, %v578_v39  ;;  %v579_v1 = vadd.f32 1.0, %v3607_v40  ;;  %v375_v39 = vld [vmem:[%s4505_s6] sm:$0x3]  ;;  %v394_v40 = vsub.s32 1, %v4041_v58 }
 0x22e   :  { %v4122_v41 = vrot.slane %v375_v39, %v4047_v61 }
 0x22f   :  { %v580_v26 = vmul.f32 0.5, %v579_v1  ;;  %v4124_v42 = vrot.slane %v375_v39, %v394_v40 }
 0x299   :  { %v590_v9 = vpop.permute.xlu0 %589 }
 0x29a   :  { %v592_v15 = vadd.f32 %v590_v9, %v586_v7 }
 0x29c   :  { %3608 = vtanh.f32 %v592_v15 }
 0x2a6   :  { %v3609_v30 = vpop.eup %3608 }
 0x2a7   :  { %v599_v33 = vmul.f32 %v3609_v30, %v580_v26 }
 0x2a9   :  { %v600_v35 = vpack.c.bf16 %v599_v33, %v599_v33 }
 0x2ab   :  { %610 = vrot.lane.b32.xlu1 %v600_v35, %s3817_s15 }
 0x2af   :  { %706 = vrot.lane.b32.xlu1 %v704_v37, %s3817_s15 }
 0x31d   :  { %v611_v38 = vpop.permute.xlu1 %610 }
 0x31e   :  { %3225 = vmatmul.mubr.msk.bf16.vlgmr.msra.gmra.mrb[8].mxu0 %vm376_vm3, %v611_v38 }
 0x31f   :  { %1117 = vmatpush1.bf16.msra.mxu0 %v3951_v10  ;;  %1148 = vmatprep.mubr.bf16.mxu0 %v3825_v0 }
 0x320   :  { %1118 = vmatprep.subr.bf16.mxu0 %v3955_v12 }
 0x321   :  { %v707_v1 = vpop.permute.xlu1 %706 }
 0x323   :  { %1119 = vmatpush1.bf16.msra.mxu0 %v3961_v13 }
 0x324   :  { %1120 = vmatprep.subr.bf16.mxu0 %v3964_v14 }
 0x327   :  { %1121 = vmatpush1.bf16.msra.mxu0 %v3966_v16 }
 0x328   :  { %1122 = vmatprep.subr.bf16.mxu0 %v3969_v17 }
 0x32b   :  { %1123 = vmatpush1.bf16.msra.mxu0 %v3972_v18 }
 0x32c   :  { %1208 = vmatprep.subr.bf16.mxu0 %v3975_v19 }
 0x3f1   :  { %v689_v46 = vpop.f32.mrb[8].mxu0 }
 0x3f2   :  { %v3455_v49 = vadd.f32 %v689_v46, %v4122_v41  ;;  %v691_v51 = vpop.f32.mrb[9].mxu0 }
 0x3f3   :  { %v693_v54 = vpop.f32.mrb[10].mxu0  ;;  %v3456_v57 = vadd.f32 %v691_v51, %v4124_v42 }
 0x3f4   :  { %3610 = vtanh.f32 %v3455_v49  ;;  %v694_v60 = vpop.f32.mrb[11].mxu0 }
 0x3f5   :  { %3612 = vtanh.f32 %v3456_v57 }
 0x3fe   :  { %v3611_v2 = vpop.eup %3610 }
 0x3ff   :  { %v700_v63 = vadd.f32 1.0, %v3611_v2  ;;  %v3613_v9 = vpop.eup %3612 }
 0x400   :  { %v702_v37 = vadd.f32 1.0, %v3613_v9 }
 0x401   :  { %v701_v7 = vmul.f32 0.5, %v700_v63 }
 0x402   :  { %v703_v39 = vmul.f32 0.5, %v702_v37 }
 0x403   :  { %v710_v58 = vmul.f32 %v3613_v9, %v701_v7  ;;  %v709_v26 = vmul.f32 %v707_v1, %v701_v7 }
 0x405   :  { %712 = vrot.lane.b32.xlu0 %v710_v58, %s3817_s15 }
 0x409   :  { %594 = vrot.lane.b32.xlu0 %v592_v15, %s3817_s15 }
 0x477   :  { %v713_v30 = vpop.permute.xlu0 %712 }
 0x478   :  { %v715_v33 = vadd.f32 %v713_v30, %v709_v26 }
 0x47a   :  { %3614 = vtanh.f32 %v715_v33 }
 0x47b   :  { %v595_v35 = vpop.permute.xlu0 %594 }
 0x47c   :  { %597 = vst.msk [vmem:[#allocation3] sm:$0xff] %vm376_vm3, %v595_v35 }
 0x483   :  { %v919_v51 = vld [vmem:[#allocation3] sm:$0xff] }
 0x484   :  { %v3615_v40 = vpop.eup %3614 }
 0x485   :  { %v722_v46 = vmul.f32 %v3615_v40, %v703_v39 }
 0x487   :  { %v723_v49 = vpack.c.bf16 %v722_v46, %v722_v46 }
 0x489   :  { %733 = vrot.lane.b32.xlu1 %v723_v49, %s3817_s15 }
 0x48d   :  { %921 = vrot.lane.b32.xlu1 %v919_v51, %s3817_s15 }
 0x4fb   :  { %v734_v54 = vpop.permute.xlu1 %733 }
 0x4fc   :  { %3234 = vmatmul.mubr.msk.bf16.vlgmr.msra.gmra.mrb[16].mxu1 %vm376_vm3, %v734_v54 }
 0x4fd   :  { %871 = vmatpush1.bf16.msra.mxu1 %v3980_v20  ;;  %902 = vmatprep.mubr.bf16.mxu1 %v3825_v0 }
 0x4fe   :  { %872 = vmatprep.subr.bf16.mxu1 %v3982_v21 }
 0x501   :  { %873 = vmatpush1.bf16.msra.mxu1 %v3986_v22 }
 0x502   :  { %874 = vmatprep.subr.bf16.mxu1 %v3989_v23 }
 0x505   :  { %875 = vmatpush1.bf16.msra.mxu1 %v3995_v24 }
 0x506   :  { %876 = vmatprep.subr.bf16.mxu1 %v4005_v27 }
 0x509   :  { %877 = vmatpush1.bf16.msra.mxu1 %v4007_v28 }
 0x50a   :  { %993 = vmatprep.subr.bf16.mxu1 %v4066_v44 }
 0x50c   :  { %3243 = vmatmul.mubr.msk.bf16.vlgmr.msra.gmra.mrb[20].mxu1 %vm376_vm3, %v611_v38 }
 0x50d   :  { %994 = vmatpush1.bf16.msra.mxu1 %v4064_v43  ;;  %1025 = vmatprep.mubr.bf16.mxu1 %v3825_v0 }
 0x50e   :  { %995 = vmatprep.subr.bf16.mxu1 %v4070_v47 }
 0x511   :  { %996 = vmatpush1.bf16.msra.mxu1 %v4078_v52 }
 0x512   :  { %997 = vmatprep.subr.bf16.mxu1 %v4083_v55 }
 0x515   :  { %998 = vmatpush1.bf16.msra.mxu1 %v4092_v3 }
 0x516   :  { %999 = vmatprep.subr.bf16.mxu1 %v4097_v5 }
 0x519   :  { %1000 = vmatpush1.bf16.msra.mxu1 %v4100_v6 }
 0x51a   :  { %1454 = vmatprep.subr.bf16.mxu1 %v3953_v11  ;;  %v922_v11 = vpop.permute.xlu1 %921 }
 0x5df   :  { %v904_v15 = vpop.f32.mrb[20].mxu1 }
 0x5e0   :  { %v911_v38 = vadd.f32 %v904_v15, %v4051_v8  ;;  %v906_v57 = vpop.f32.mrb[21].mxu1 }
 0x5e1   :  { %v912_v60 = vadd.f32 %v906_v57, %v4053_v25  ;;  %v908_v2 = vpop.f32.mrb[22].mxu1 }
 0x5e2   :  { %3616 = vtanh.f32 %v911_v38  ;;  %v909_v63 = vpop.f32.mrb[23].mxu1 }
 0x5e3   :  { %3618 = vtanh.f32 %v912_v60 }
 0x5ec   :  { %v3617_v7 = vpop.eup %3616 }
 0x5ed   :  { %v915_v9 = vadd.f32 1.0, %v3617_v7  ;;  %v3619_v1 = vpop.eup %3618 }
 0x5ee   :  { %v917_v25 = vadd.f32 1.0, %v3619_v1 }
 0x5ef   :  { %v916_v58 = vmul.f32 0.5, %v915_v9 }
 0x5f0   :  { %v918_v39 = vmul.f32 0.5, %v917_v25 }
 0x5f1   :  { %v925_v26 = vmul.f32 %v3619_v1, %v916_v58  ;;  %v924_v30 = vmul.f32 %v922_v11, %v916_v58 }
 0x5f3   :  { %927 = vrot.lane.b32.xlu0 %v925_v26, %s3817_s15 }
 0x5f7   :  { %717 = vrot.lane.b32.xlu0 %v715_v33, %s3817_s15 }
 0x665   :  { %v928_v35 = vpop.permute.xlu0 %927 }
 0x666   :  { %v930_v8 = vadd.f32 %v928_v35, %v924_v30 }
 0x668   :  { %3620 = vtanh.f32 %v930_v8 }
 0x669   :  { %v718_v37 = vpop.permute.xlu0 %717 }
 0x66a   :  { %720 = vst.msk [vmem:[#allocation4] sm:$0xff] %vm376_vm3, %v718_v37 }
 0x671   :  { %v1042_v51 = vld [vmem:[#allocation4] sm:$0xff] }
 0x672   :  { %v3621_v40 = vpop.eup %3620 }
 0x673   :  { %v937_v46 = vmul.f32 %v3621_v40, %v918_v39 }
 0x675   :  { %v938_v49 = vpack.c.bf16 %v937_v46, %v937_v46 }
 0x677   :  { %948 = vrot.lane.b32.xlu1 %v938_v49, %s3817_s15 }
 0x67b   :  { %1044 = vrot.lane.b32.xlu1 %v1042_v51, %s3817_s15 }
 0x6e9   :  { %v949_v54 = vpop.permute.xlu1 %948 }
 0x6ea   :  { %3252 = vmatmul.mubr.msk.bf16.vlgmr.msra.gmra.mrb[16].mxu1 %vm376_vm3, %v949_v54 }
 0x6eb   :  { %1455 = vmatpush1.bf16.msra.mxu1 %v3951_v10  ;;  %1486 = vmatprep.mubr.bf16.mxu1 %v3825_v0 }
 0x6ec   :  { %1456 = vmatprep.subr.bf16.mxu1 %v3955_v12 }
 0x6ef   :  { %1457 = vmatpush1.bf16.msra.mxu1 %v3961_v13 }
 0x6f0   :  { %1458 = vmatprep.subr.bf16.mxu1 %v3964_v14 }
 0x6f3   :  { %1459 = vmatpush1.bf16.msra.mxu1 %v3966_v16 }
 0x6f4   :  { %1460 = vmatprep.subr.bf16.mxu1 %v3969_v17  ;;  %v1045_v17 = vpop.permute.xlu1 %1044 }
 0x6f7   :  { %1461 = vmatpush1.bf16.msra.mxu1 %v3972_v18 }
 0x6f8   :  { %1546 = vmatprep.subr.bf16.mxu1 %v3975_v19 }
 0x7bd   :  { %v1027_v33 = vpop.f32.mrb[16].mxu1 }
 0x7be   :  { %v3457_v15 = vadd.f32 %v1027_v33, %v4122_v41  ;;  %v1029_v10 = vpop.f32.mrb[17].mxu1 }
 0x7bf   :  { %v1031_v38 = vpop.f32.mrb[18].mxu1  ;;  %v3458_v12 = vadd.f32 %v1029_v10, %v4124_v42 }
 0x7c0   :  { %3622 = vtanh.f32 %v3457_v15  ;;  %v1032_v57 = vpop.f32.mrb[19].mxu1 }
 0x7c1   :  { %3624 = vtanh.f32 %v3458_v12 }
 0x7ca   :  { %v3623_v13 = vpop.eup %3622 }
 0x7cb   :  { %v1038_v14 = vadd.f32 1.0, %v3623_v13  ;;  %v3625_v16 = vpop.eup %3624 }
 0x7cc   :  { %v1040_v9 = vadd.f32 1.0, %v3625_v16 }
 0x7cd   :  { %v1039_v60 = vmul.f32 0.5, %v1038_v14 }
 0x7ce   :  { %v1041_v58 = vmul.f32 0.5, %v1040_v9 }
 0x7cf   :  { %v1048_v2 = vmul.f32 %v3625_v16, %v1039_v60  ;;  %v1047_v18 = vmul.f32 %v1045_v17, %v1039_v60 }
 0x7d1   :  { %1050 = vrot.lane.b32.xlu0 %v1048_v2, %s3817_s15 }
 0x7d5   :  { %932 = vrot.lane.b32.xlu0 %v930_v8, %s3817_s15 }
 0x843   :  { %v1051_v19 = vpop.permute.xlu0 %1050 }
 0x844   :  { %v1053_v63 = vadd.f32 %v1051_v19, %v1047_v18 }
 0x846   :  { %3626 = vtanh.f32 %v1053_v63 }
 0x847   :  { %v933_v7 = vpop.permute.xlu0 %932 }
 0x848   :  { %935 = vst.msk [vmem:[#allocation3] sm:$0xff] %vm376_vm3, %v933_v7 }
 0x84f   :  { %v1257_v30 = vld [vmem:[#allocation3] sm:$0xff] }
 0x850   :  { %v3627_v1 = vpop.eup %3626 }
 0x851   :  { %v1060_v26 = vmul.f32 %v3627_v1, %v1041_v58 }
 0x853   :  { %v1061_v11 = vpack.c.bf16 %v1060_v26, %v1060_v26 }
 0x855   :  { %1071 = vrot.lane.b32.xlu1 %v1061_v11, %s3817_s15 }
 0x859   :  { %1259 = vrot.lane.b32.xlu1 %v1257_v30, %s3817_s15 }
 0x8c7   :  { %v1072_v35 = vpop.permute.xlu1 %1071 }
 0x8c8   :  { %3261 = vmatmul.mubr.msk.bf16.vlgmr.msra.gmra.mrb[16].mxu0 %vm376_vm3, %v1072_v35 }
 0x8c9   :  { %1209 = vmatpush1.bf16.msra.mxu0 %v3980_v20  ;;  %1240 = vmatprep.mubr.bf16.mxu0 %v3825_v0 }
 0x8ca   :  { %1210 = vmatprep.subr.bf16.mxu0 %v3982_v21 }
 0x8cb   :  { %v1260_v10 = vpop.permute.xlu1 %1259 }
 0x8cd   :  { %1211 = vmatpush1.bf16.msra.mxu0 %v3986_v22 }
 0x8ce   :  { %1212 = vmatprep.subr.bf16.mxu0 %v3989_v23 }
 0x8d1   :  { %1213 = vmatpush1.bf16.msra.mxu0 %v3995_v24 }
 0x8d2   :  { %1214 = vmatprep.subr.bf16.mxu0 %v4005_v27 }
 0x8d5   :  { %1215 = vmatpush1.bf16.msra.mxu0 %v4007_v28 }
 0x8d6   :  { %1331 = vmatprep.subr.bf16.mxu0 %v4066_v44 }
 0x8d8   :  { %3270 = vmatmul.mubr.msk.bf16.vlgmr.msra.gmra.mrb[20].mxu0 %vm376_vm3, %v949_v54 }
 0x8d9   :  { %1332 = vmatpush1.bf16.msra.mxu0 %v4064_v43  ;;  %1363 = vmatprep.mubr.bf16.mxu0 %v3825_v0 }
 0x8da   :  { %1333 = vmatprep.subr.bf16.mxu0 %v4070_v47 }
 0x8dd   :  { %1334 = vmatpush1.bf16.msra.mxu0 %v4078_v52 }
 0x8de   :  { %1335 = vmatprep.subr.bf16.mxu0 %v4083_v55 }
 0x8e1   :  { %1336 = vmatpush1.bf16.msra.mxu0 %v4092_v3 }
 0x8e2   :  { %1337 = vmatprep.subr.bf16.mxu0 %v4097_v5 }
 0x8e5   :  { %1338 = vmatpush1.bf16.msra.mxu0 %v4100_v6 }
 0x9ab   :  { %v1242_v8 = vpop.f32.mrb[20].mxu0 }
 0x9ac   :  { %v1249_v37 = vadd.f32 %v1242_v8, %v4055_v29  ;;  %v1244_v25 = vpop.f32.mrb[21].mxu0 }
 0x9ad   :  { %v1250_v39 = vadd.f32 %v1244_v25, %v4057_v32  ;;  %v1246_v40 = vpop.f32.mrb[22].mxu0 }
 0x9ae   :  { %3628 = vtanh.f32 %v1249_v37  ;;  %v1247_v46 = vpop.f32.mrb[23].mxu0 }
 0x9af   :  { %3630 = vtanh.f32 %v1250_v39 }
 0x9b8   :  { %v3629_v49 = vpop.eup %3628 }
 0x9b9   :  { %v1253_v51 = vadd.f32 1.0, %v3629_v49  ;;  %v3631_v33 = vpop.eup %3630 }
 0x9ba   :  { %v1255_v32 = vadd.f32 1.0, %v3631_v33 }
 0x9bb   :  { %v1254_v54 = vmul.f32 0.5, %v1253_v51 }
 0x9bc   :  { %v1256_v13 = vmul.f32 0.5, %v1255_v32 }
 0x9bd   :  { %v1263_v15 = vmul.f32 %v3631_v33, %v1254_v54  ;;  %v1262_v38 = vmul.f32 %v1260_v10, %v1254_v54 }
 0x9bf   :  { %1265 = vrot.lane.b32.xlu0 %v1263_v15, %s3817_s15 }
 0x9c3   :  { %1055 = vrot.lane.b32.xlu0 %v1053_v63, %s3817_s15 }
 0xa31   :  { %v1266_v12 = vpop.permute.xlu0 %1265 }
 0xa32   :  { %v1268_v29 = vadd.f32 %v1266_v12, %v1262_v38 }
 0xa34   :  { %3632 = vtanh.f32 %v1268_v29 }
 0xa35   :  { %v1056_v57 = vpop.permute.xlu0 %1055 }
 0xa36   :  { %1058 = vst.msk [vmem:[#allocation4] sm:$0xff] %vm376_vm3, %v1056_v57 }
 0xa3d   :  { %v1380_v2 = vld [vmem:[#allocation4] sm:$0xff] }
 0xa3e   :  { %v3633_v14 = vpop.eup %3632 }
 0xa3f   :  { %v1275_v60 = vmul.f32 %v3633_v14, %v1256_v13 }
 0xa41   :  { %v1276_v16 = vpack.c.bf16 %v1275_v60, %v1275_v60 }
 0xa43   :  { %1286 = vrot.lane.b32.xlu1 %v1276_v16, %s3817_s15 }
 0xa47   :  { %1382 = vrot.lane.b32.xlu1 %v1380_v2, %s3817_s15 }
 0xab5   :  { %v1287_v17 = vpop.permute.xlu1 %1286 }
 0xab6   :  { %3279 = vmatmul.mubr.msk.bf16.vlgmr.msra.gmra.mrb[16].mxu0 %vm376_vm3, %v1287_v17 }
 0xab7   :  { %1824 = vmatprep.mubr.bf16.mxu0 %v3825_v0 }
 0xab9   :  { %v1383_v8 = vpop.permute.xlu1 %1382 }
 0xb89   :  { %v1365_v18 = vpop.f32.mrb[16].mxu0 }
 0xb8a   :  { %v3459_v19 = vadd.f32 %v1365_v18, %v4122_v41  ;;  %v1367_v63 = vpop.f32.mrb[17].mxu0 }
 0xb8b   :  { %v1369_v7 = vpop.f32.mrb[18].mxu0  ;;  %v3460_v9 = vadd.f32 %v1367_v63, %v4124_v42 }
 0xb8c   :  { %3634 = vtanh.f32 %v3459_v19  ;;  %v1370_v58 = vpop.f32.mrb[19].mxu0 }
 0xb8d   :  { %3636 = vtanh.f32 %v3460_v9 }
 0xb96   :  { %v3635_v1 = vpop.eup %3634 }
 0xb97   :  { %v1376_v26 = vadd.f32 1.0, %v3635_v1  ;;  %v3637_v30 = vpop.eup %3636  ;;  %v4247_v1 = vld [vmem:[#allocation12] ss:$8 sps:$4 sm:$0xff]  }
 0xb98   :  { %v1378_v46 = vadd.f32 1.0, %v3637_v30 }
 0xb99   :  { %v1377_v11 = vmul.f32 0.5, %v1376_v26  ;;  %v4249_v26 = vld [vmem:[#allocation12 + $0x4] ss:$8 sps:$4 sm:$0xff]  }
 0xb9a   :  { %v1379_v49 = vmul.f32 0.5, %v1378_v46  ;;  %1792 = vmatprep.subr.bf16.mxu0 %v4249_v26 }
 0xb9b   :  { %v1386_v35 = vmul.f32 %v3637_v30, %v1377_v11  ;;  %v1385_v37 = vmul.f32 %v1383_v8, %v1377_v11  ;;  %v4251_v11 = vld [vmem:[#allocation12 + $0x14] ss:$8 sps:$4 sm:$0xff]   ;;  %1793 = vmatpush1.bf16.msra.mxu0 %v4247_v1  ;;  %v4256_v30 = vld [vmem:[#allocation12 + $0x10] ss:$8 sps:$4 sm:$0xff]   ;;  %v4264_v8 = vld [vmem:[#allocation12 + $0x20] ss:$8 sps:$4 sm:$0xff]  }
 0xb9c   :  { %1794 = vmatprep.subr.bf16.mxu0 %v4251_v11 }
 0xb9d   :  { %1388 = vrot.lane.b32.xlu0 %v1386_v35, %s3817_s15  ;;  %v4260_v35 = vld [vmem:[#allocation12 + $0x24] ss:$8 sps:$4 sm:$0xff]  }
 0xb9f   :  { %1795 = vmatpush1.bf16.msra.mxu0 %v4256_v30 }
 0xba0   :  { %1796 = vmatprep.subr.bf16.mxu0 %v4260_v35 }
 0xba1   :  { %1270 = vrot.lane.b32.xlu0 %v1268_v29, %s3817_s15 }
 0xba3   :  { %1797 = vmatpush1.bf16.msra.mxu0 %v4264_v8 }
 0xc0f   :  { %v1389_v25 = vpop.permute.xlu0 %1388 }
 0xc10   :  { %v1391_v39 = vadd.f32 %v1389_v25, %v1385_v37  ;;  %v4268_v37 = vld [vmem:[#allocation12 + $0x34] ss:$8 sps:$4 sm:$0xff]   ;;  %v4272_v25 = vld [vmem:[#allocation12 + $0x30] ss:$8 sps:$4 sm:$0xff]  }
 0xc11   :  { %1798 = vmatprep.subr.bf16.mxu0 %v4268_v37 }
 0xc12   :  { %3638 = vtanh.f32 %v1391_v39  ;;  %1799 = vmatpush1.bf16.msra.mxu0 %v4272_v25 }
 0xc13   :  { %v1271_v40 = vpop.permute.xlu0 %1270 }
 0xc14   :  { %1273 = vst.msk [vmem:[#allocation3] sm:$0xff] %vm376_vm3, %v1271_v40 }
 0xc1b   :  { %v1595_v15 = vld [vmem:[#allocation3] sm:$0xff] }
 0xc1c   :  { %v3639_v51 = vpop.eup %3638 }
 0xc1d   :  { %v1398_v54 = vmul.f32 %v3639_v51, %v1379_v49 }
 0xc1f   :  { %v1399_v33 = vpack.c.bf16 %v1398_v54, %v1398_v54 }
 0xc21   :  { %1409 = vrot.lane.b32.xlu1 %v1399_v33, %s3817_s15 }
 0xc25   :  { %1597 = vrot.lane.b32.xlu1 %v1595_v15, %s3817_s15 }
 0xc93   :  { %v1410_v10 = vpop.permute.xlu1 %1409 }
 0xc94   :  { %3288 = vmatmul.mubr.msk.bf16.vlgmr.msra.gmra.mrb[24].mxu1 %vm376_vm3, %v1410_v10 }
 0xc95   :  { %1547 = vmatpush1.bf16.msra.mxu1 %v3980_v20  ;;  %1578 = vmatprep.mubr.bf16.mxu1 %v3825_v0 }
 0xc96   :  { %1548 = vmatprep.subr.bf16.mxu1 %v3982_v21 }
 0xc99   :  { %1549 = vmatpush1.bf16.msra.mxu1 %v3986_v22 }
 0xc9a   :  { %1550 = vmatprep.subr.bf16.mxu1 %v3989_v23 }
 0xc9d   :  { %1551 = vmatpush1.bf16.msra.mxu1 %v3995_v24 }
 0xc9e   :  { %1552 = vmatprep.subr.bf16.mxu1 %v4005_v27 }
 0xca1   :  { %1553 = vmatpush1.bf16.msra.mxu1 %v4007_v28 }
 0xca2   :  { %1669 = vmatprep.subr.bf16.mxu1 %v4066_v44 }
 0xca4   :  { %3297 = vmatmul.mubr.msk.bf16.vlgmr.msra.gmra.mrb[28].mxu1 %vm376_vm3, %v1287_v17 }
 0xca5   :  { %1670 = vmatpush1.bf16.msra.mxu1 %v4064_v43  ;;  %1701 = vmatprep.mubr.bf16.mxu1 %v3825_v0 }
 0xca6   :  { %1671 = vmatprep.subr.bf16.mxu1 %v4070_v47 }
 0xca9   :  { %1672 = vmatpush1.bf16.msra.mxu1 %v4078_v52 }
 0xcaa   :  { %1673 = vmatprep.subr.bf16.mxu1 %v4083_v55  ;;  %v1598_v55 = vpop.permute.xlu1 %1597 }
 0xcad   :  { %1674 = vmatpush1.bf16.msra.mxu1 %v4092_v3 }
 0xcae   :  { %1675 = vmatprep.subr.bf16.mxu1 %v4097_v5 }
 0xcb1   :  { %1676 = vmatpush1.bf16.msra.mxu1 %v4100_v6 }
 0xcb2   :  { %2130 = vmatprep.subr.bf16.mxu1 %v4249_v26 }
 0xd77   :  { %v1580_v20 = vpop.f32.mrb[28].mxu1 }
 0xd78   :  { %v1587_v21 = vadd.f32 %v1580_v20, %v4059_v34  ;;  %v1582_v22 = vpop.f32.mrb[29].mxu1 }
 0xd79   :  { %v1588_v23 = vadd.f32 %v1582_v22, %v4061_v36  ;;  %v1584_v24 = vpop.f32.mrb[30].mxu1 }
 0xd7a   :  { %3640 = vtanh.f32 %v1587_v21  ;;  %v1585_v27 = vpop.f32.mrb[31].mxu1  ;;  %v4288_v24 = vld [vmem:[#allocation9 + $0x14] ss:$8 sps:$4 sm:$0xff]  }
 0xd7b   :  { %3642 = vtanh.f32 %v1588_v23  ;;  %v4286_v23 = vld [vmem:[#allocation9] ss:$8 sps:$4 sm:$0xff]  }
 0xd84   :  { %v3641_v28 = vpop.eup %3640 }
 0xd85   :  { %v1591_v43 = vadd.f32 1.0, %v3641_v28  ;;  %v3643_v47 = vpop.eup %3642  ;;  %v4292_v28 = vld [vmem:[#allocation9 + $0x10] ss:$8 sps:$4 sm:$0xff]  }
 0xd86   :  { %v1593_v36 = vadd.f32 1.0, %v3643_v47 }
 0xd87   :  { %v1592_v44 = vmul.f32 0.5, %v1591_v43  ;;  %v4296_v43 = vld [vmem:[#allocation9 + $0x24] ss:$8 sps:$4 sm:$0xff]  }
 0xd88   :  { %v1594_v38 = vmul.f32 0.5, %v1593_v36 }
 0xd89   :  { %v1601_v52 = vmul.f32 %v3643_v47, %v1592_v44  ;;  %v1600_v3 = vmul.f32 %v1598_v55, %v1592_v44  ;;  %v4299_v44 = vld [vmem:[#allocation9 + $0x20] ss:$8 sps:$4 sm:$0xff]   ;;  %v4302_v47 = vld [vmem:[#allocation9 + $0x34] ss:$8 sps:$4 sm:$0xff]  }
 0xd8b   :  { %1603 = vrot.lane.b32.xlu0 %v1601_v52, %s3817_s15  ;;  %v4305_v52 = vld [vmem:[#allocation9 + $0x30] ss:$8 sps:$4 sm:$0xff]  }
 0xd8f   :  { %1393 = vrot.lane.b32.xlu0 %v1391_v39, %s3817_s15  ;;  %v4276_v39 = vld [vmem:[#allocation9 + $0x4] ss:$8 sps:$4 sm:$0xff]  }
 0xd90   :  { %1884 = vmatprep.subr.bf16.mxu0 %v4276_v39 }
 0xdfd   :  { %v1604_v5 = vpop.permute.xlu0 %1603 }
 0xdfe   :  { %v1606_v34 = vadd.f32 %v1604_v5, %v1600_v3 }
 0xe00   :  { %3644 = vtanh.f32 %v1606_v34 }
 0xe01   :  { %v1394_v6 = vpop.permute.xlu0 %1393 }
 0xe02   :  { %1396 = vst.msk [vmem:[#allocation4] sm:$0xff] %vm376_vm3, %v1394_v6 }
 0xe09   :  { %v1718_v32 = vld [vmem:[#allocation4] sm:$0xff] }
 0xe0a   :  { %v3645_v12 = vpop.eup %3644 }
 0xe0b   :  { %v1613_v29 = vmul.f32 %v3645_v12, %v1594_v38 }
 0xe0d   :  { %v1614_v57 = vpack.c.bf16 %v1613_v29, %v1613_v29 }
 0xe0f   :  { %1624 = vrot.lane.b32.xlu1 %v1614_v57, %s3817_s15 }
 0xe13   :  { %1720 = vrot.lane.b32.xlu1 %v1718_v32, %s3817_s15 }
 0xe81   :  { %v4238_v13 = vpop.permute.xlu1 %1624 }
 0xe82   :  { %3306 = vmatmul.mubr.msk.bf16.vlgmr.msra.gmra.mrb[24].mxu1 %vm376_vm3, %v4238_v13 }
 0xe83   :  { %2162 = vmatprep.mubr.bf16.mxu1 %v3825_v0  ;;  %2131 = vmatpush1.bf16.msra.mxu1 %v4247_v1 }
 0xe84   :  { %2132 = vmatprep.subr.bf16.mxu1 %v4251_v11 }
 0xe85   :  { %v1721_v40 = vpop.permute.xlu1 %1720 }
 0xe87   :  { %2133 = vmatpush1.bf16.msra.mxu1 %v4256_v30 }
 0xe88   :  { %2134 = vmatprep.subr.bf16.mxu1 %v4260_v35 }
 0xe8b   :  { %2135 = vmatpush1.bf16.msra.mxu1 %v4264_v8 }
 0xe8c   :  { %2136 = vmatprep.subr.bf16.mxu1 %v4268_v37 }
 0xe8f   :  { %2137 = vmatpush1.bf16.msra.mxu1 %v4272_v25 }
 0xe90   :  { %2222 = vmatprep.subr.bf16.mxu1 %v4276_v39 }
 0xf55   :  { %v1703_v14 = vpop.f32.mrb[24].mxu1 }
 0xf56   :  { %v3461_v60 = vadd.f32 %v1703_v14, %v4122_v41  ;;  %v1705_v16 = vpop.f32.mrb[25].mxu1  ;;  %v4318_v14 = vld [vmem:[#allocation10 + $0x4] ss:$8 sps:$4 sm:$0xff]  }
 0xf57   :  { %v1707_v2 = vpop.f32.mrb[26].mxu1  ;;  %v3462_v17 = vadd.f32 %v1705_v16, %v4124_v42  ;;  %v4330_v16 = vld [vmem:[#allocation10 + $0x20] ss:$8 sps:$4 sm:$0xff]  }
 0xf58   :  { %3646 = vtanh.f32 %v3461_v60  ;;  %v1708_v18 = vpop.f32.mrb[27].mxu1  ;;  %v4327_v60 = vld [vmem:[#allocation10 + $0x24] ss:$8 sps:$4 sm:$0xff]   ;;  %v4333_v2 = vld [vmem:[#allocation10 + $0x34] ss:$8 sps:$4 sm:$0xff]  }
 0xf59   :  { %3648 = vtanh.f32 %v3462_v17  ;;  %v4336_v17 = vld [vmem:[#allocation10 + $0x30] ss:$8 sps:$4 sm:$0xff]  }
 0xf62   :  { %v3647_v19 = vpop.eup %3646 }
 0xf63   :  { %v1714_v63 = vadd.f32 1.0, %v3647_v19  ;;  %v3649_v9 = vpop.eup %3648 }
 0xf64   :  { %v1716_v33 = vadd.f32 1.0, %v3649_v9 }
 0xf65   :  { %v1715_v7 = vmul.f32 0.5, %v1714_v63 }
 0xf66   :  { %v1717_v15 = vmul.f32 0.5, %v1716_v33 }
 0xf67   :  { %v1724_v58 = vmul.f32 %v3649_v9, %v1715_v7  ;;  %v1723_v46 = vmul.f32 %v1721_v40, %v1715_v7 }
 0xf69   :  { %1726 = vrot.lane.b32.xlu0 %v1724_v58, %s3817_s15 }
 0xf6d   :  { %1608 = vrot.lane.b32.xlu0 %v1606_v34, %s3817_s15 }
 0xfdb   :  { %v1727_v49 = vpop.permute.xlu0 %1726 }
 0xfdc   :  { %v1729_v51 = vadd.f32 %v1727_v49, %v1723_v46 }
 0xfde   :  { %3650 = vtanh.f32 %v1729_v51 }
 0xfdf   :  { %v1609_v54 = vpop.permute.xlu0 %1608 }
 0xfe0   :  { %1611 = vst.msk [vmem:[#allocation3] sm:$0xff] %vm376_vm3, %v1609_v54 }
 0xfe7   :  { %v1933_v22 = vld [vmem:[#allocation3] sm:$0xff] }
 0xfe8   :  { %v3651_v10 = vpop.eup %3650 }
 0xfe9   :  { %v1736_v20 = vmul.f32 %v3651_v10, %v1717_v15 }
 0xfeb   :  { %v1737_v21 = vpack.c.bf16 %v1736_v20, %v1736_v20 }
 0xfed   :  { %1747 = vrot.lane.b32.xlu1 %v1737_v21, %s3817_s15 }
 0xff1   :  { %1935 = vrot.lane.b32.xlu1 %v1933_v22, %s3817_s15 }
0x105f   :  { %v1748_v27 = vpop.permute.xlu1 %1747 }
0x1060   :  { %3315 = vmatmul.mubr.msk.bf16.vlgmr.msra.gmra.mrb[24].mxu0 %vm376_vm3, %v1748_v27 }
0x1061   :  { %1885 = vmatpush1.bf16.msra.mxu0 %v4286_v23  ;;  %1916 = vmatprep.mubr.bf16.mxu0 %v3825_v0 }
0x1062   :  { %1886 = vmatprep.subr.bf16.mxu0 %v4288_v24 }
0x1063   :  { %v1936_v18 = vpop.permute.xlu1 %1935 }
0x1065   :  { %1887 = vmatpush1.bf16.msra.mxu0 %v4292_v28 }
0x1066   :  { %1888 = vmatprep.subr.bf16.mxu0 %v4296_v43 }
0x1069   :  { %1889 = vmatpush1.bf16.msra.mxu0 %v4299_v44 }
0x106a   :  { %1890 = vmatprep.subr.bf16.mxu0 %v4302_v47 }
0x106d   :  { %1891 = vmatpush1.bf16.msra.mxu0 %v4305_v52 }
0x106e   :  { %2007 = vmatprep.subr.bf16.mxu0 %v4318_v14 }
0x1070   :  { %3324 = vmatmul.mubr.msk.bf16.vlgmr.msra.gmra.mrb[28].mxu0 %vm376_vm3, %v4238_v13  ;;  %v4316_v13 = vld [vmem:[#allocation10] ss:$8 sps:$4 sm:$0xff]  }
0x1071   :  { %2039 = vmatprep.mubr.bf16.mxu0 %v3825_v0  ;;  %2008 = vmatpush1.bf16.msra.mxu0 %v4316_v13 }
0x1143   :  { %v1918_v55 = vpop.f32.mrb[28].mxu0 }
0x1144   :  { %v1925_v3 = vadd.f32 %v1918_v55, %v4068_v45  ;;  %v1920_v5 = vpop.f32.mrb[29].mxu0  ;;  %v4320_v45 = vld [vmem:[#allocation10 + $0x14] ss:$8 sps:$4 sm:$0xff]  }
0x1145   :  { %v1926_v34 = vadd.f32 %v1920_v5, %v4072_v48  ;;  %v1922_v6 = vpop.f32.mrb[30].mxu0  ;;  %v4324_v48 = vld [vmem:[#allocation10 + $0x10] ss:$8 sps:$4 sm:$0xff]   ;;  %2009 = vmatprep.subr.bf16.mxu0 %v4320_v45 }
0x1146   :  { %3652 = vtanh.f32 %v1925_v3  ;;  %v1923_v36 = vpop.f32.mrb[31].mxu0  ;;  %2010 = vmatpush1.bf16.msra.mxu0 %v4324_v48 }
0x1147   :  { %3654 = vtanh.f32 %v1926_v34  ;;  %2011 = vmatprep.subr.bf16.mxu0 %v4327_v60 }
0x114a   :  { %2012 = vmatpush1.bf16.msra.mxu0 %v4330_v16 }
0x114b   :  { %2013 = vmatprep.subr.bf16.mxu0 %v4333_v2 }
0x114e   :  { %2014 = vmatpush1.bf16.msra.mxu0 %v4336_v17 }
0x114f   :  { %2468 = vmatprep.subr.bf16.mxu0 %v4249_v26 }
0x1150   :  { %v3653_v38 = vpop.eup %3652 }
0x1151   :  { %v1929_v12 = vadd.f32 1.0, %v3653_v38  ;;  %v3655_v57 = vpop.eup %3654 }
0x1152   :  { %v1931_v58 = vadd.f32 1.0, %v3655_v57 }
0x1153   :  { %v1930_v29 = vmul.f32 0.5, %v1929_v12 }
0x1154   :  { %v1932_v40 = vmul.f32 0.5, %v1931_v58 }
0x1155   :  { %v1939_v32 = vmul.f32 %v3655_v57, %v1930_v29  ;;  %v1938_v19 = vmul.f32 %v1936_v18, %v1930_v29 }
0x1157   :  { %1941 = vrot.lane.b32.xlu0 %v1939_v32, %s3817_s15 }
0x115b   :  { %1731 = vrot.lane.b32.xlu0 %v1729_v51, %s3817_s15 }
0x11c9   :  { %v1942_v63 = vpop.permute.xlu0 %1941 }
0x11ca   :  { %v1944_v7 = vadd.f32 %v1942_v63, %v1938_v19 }
0x11cc   :  { %3656 = vtanh.f32 %v1944_v7 }
0x11cd   :  { %v1732_v9 = vpop.permute.xlu0 %1731 }
0x11ce   :  { %1734 = vst.msk [vmem:[#allocation4] sm:$0xff] %vm376_vm3, %v1732_v9 }
0x11d5   :  { %v2056_v54 = vld [vmem:[#allocation4] sm:$0xff] }
0x11d6   :  { %v3657_v46 = vpop.eup %3656 }
0x11d7   :  { %v1951_v49 = vmul.f32 %v3657_v46, %v1932_v40 }
0x11d9   :  { %v1952_v51 = vpack.c.bf16 %v1951_v49, %v1951_v49 }
0x11db   :  { %1962 = vrot.lane.b32.xlu1 %v1952_v51, %s3817_s15 }
0x11df   :  { %2058 = vrot.lane.b32.xlu1 %v2056_v54, %s3817_s15 }
0x124d   :  { %v1963_v33 = vpop.permute.xlu1 %1962 }
0x124e   :  { %3333 = vmatmul.mubr.msk.bf16.vlgmr.msra.gmra.mrb[24].mxu0 %vm376_vm3, %v1963_v33 }
0x124f   :  { %2469 = vmatpush1.bf16.msra.mxu0 %v4247_v1  ;;  %2500 = vmatprep.mubr.bf16.mxu0 %v3825_v0 }
0x1250   :  { %2470 = vmatprep.subr.bf16.mxu0 %v4251_v11 }
0x1251   :  { %v2059_v36 = vpop.permute.xlu1 %2058 }
0x1253   :  { %2471 = vmatpush1.bf16.msra.mxu0 %v4256_v30 }
0x1254   :  { %2472 = vmatprep.subr.bf16.mxu0 %v4260_v35 }
0x1257   :  { %2473 = vmatpush1.bf16.msra.mxu0 %v4264_v8 }
0x1258   :  { %2474 = vmatprep.subr.bf16.mxu0 %v4268_v37 }
0x125b   :  { %2475 = vmatpush1.bf16.msra.mxu0 %v4272_v25 }
0x125c   :  { %2560 = vmatprep.subr.bf16.mxu0 %v4276_v39 }
0x1321   :  { %v2041_v15 = vpop.f32.mrb[24].mxu0 }
0x1322   :  { %v3463_v10 = vadd.f32 %v2041_v15, %v4122_v41  ;;  %v2043_v20 = vpop.f32.mrb[25].mxu0 }
0x1323   :  { %v2045_v21 = vpop.f32.mrb[26].mxu0  ;;  %v3464_v22 = vadd.f32 %v2043_v20, %v4124_v42 }
0x1324   :  { %3658 = vtanh.f32 %v3463_v10  ;;  %v2046_v27 = vpop.f32.mrb[27].mxu0 }
0x1325   :  { %3660 = vtanh.f32 %v3464_v22 }
0x132e   :  { %v3659_v55 = vpop.eup %3658 }
0x132f   :  { %v2052_v3 = vadd.f32 1.0, %v3659_v55  ;;  %v3661_v34 = vpop.eup %3660 }
0x1330   :  { %v2054_v32 = vadd.f32 1.0, %v3661_v34 }
0x1331   :  { %v2053_v5 = vmul.f32 0.5, %v2052_v3 }
0x1332   :  { %v2055_v18 = vmul.f32 0.5, %v2054_v32 }
0x1333   :  { %v2062_v6 = vmul.f32 %v3661_v34, %v2053_v5  ;;  %v2061_v38 = vmul.f32 %v2059_v36, %v2053_v5 }
0x1335   :  { %2064 = vrot.lane.b32.xlu0 %v2062_v6, %s3817_s15 }
0x1339   :  { %1946 = vrot.lane.b32.xlu0 %v1944_v7, %s3817_s15 }
0x13a7   :  { %v2065_v12 = vpop.permute.xlu0 %2064 }
0x13a8   :  { %v2067_v29 = vadd.f32 %v2065_v12, %v2061_v38 }
0x13aa   :  { %3662 = vtanh.f32 %v2067_v29 }
0x13ab   :  { %v1947_v57 = vpop.permute.xlu0 %1946 }
0x13ac   :  { %1949 = vst.msk [vmem:[#allocation3] sm:$0xff] %vm376_vm3, %v1947_v57 }
0x13b3   :  { %v2271_v58 = vld [vmem:[#allocation3] sm:$0xff] }
0x13b4   :  { %v3663_v19 = vpop.eup %3662 }
0x13b5   :  { %v2074_v63 = vmul.f32 %v3663_v19, %v2055_v18 }
0x13b7   :  { %v2075_v9 = vpack.c.bf16 %v2074_v63, %v2074_v63 }
0x13b9   :  { %2085 = vrot.lane.b32.xlu1 %v2075_v9, %s3817_s15 }
0x13bd   :  { %2273 = vrot.lane.b32.xlu1 %v2271_v58, %s3817_s15 }
0x142b   :  { %v2086_v40 = vpop.permute.xlu1 %2085 }
0x142c   :  { %3342 = vmatmul.mubr.msk.bf16.vlgmr.msra.gmra.mrb[32].mxu1 %vm376_vm3, %v2086_v40 }
0x142d   :  { %2223 = vmatpush1.bf16.msra.mxu1 %v4286_v23  ;;  %2254 = vmatprep.mubr.bf16.mxu1 %v3825_v0 }
0x142e   :  { %2224 = vmatprep.subr.bf16.mxu1 %v4288_v24 }
0x1431   :  { %2225 = vmatpush1.bf16.msra.mxu1 %v4292_v28 }
0x1432   :  { %2226 = vmatprep.subr.bf16.mxu1 %v4296_v43 }
0x1435   :  { %2227 = vmatpush1.bf16.msra.mxu1 %v4299_v44 }
0x1436   :  { %2228 = vmatprep.subr.bf16.mxu1 %v4302_v47 }
0x1439   :  { %2229 = vmatpush1.bf16.msra.mxu1 %v4305_v52 }
0x143a   :  { %2345 = vmatprep.subr.bf16.mxu1 %v4318_v14 }
0x143c   :  { %3351 = vmatmul.mubr.msk.bf16.vlgmr.msra.gmra.mrb[36].mxu1 %vm376_vm3, %v1963_v33 }
0x143d   :  { %2346 = vmatpush1.bf16.msra.mxu1 %v4316_v13  ;;  %2377 = vmatprep.mubr.bf16.mxu1 %v3825_v0 }
0x143e   :  { %2347 = vmatprep.subr.bf16.mxu1 %v4320_v45 }
0x1441   :  { %2348 = vmatpush1.bf16.msra.mxu1 %v4324_v48 }
0x1442   :  { %2349 = vmatprep.subr.bf16.mxu1 %v4327_v60 }
0x1445   :  { %2350 = vmatpush1.bf16.msra.mxu1 %v4330_v16 }
0x1446   :  { %2351 = vmatprep.subr.bf16.mxu1 %v4333_v2 }
0x1449   :  { %2352 = vmatpush1.bf16.msra.mxu1 %v4336_v17 }
0x144a   :  { %2806 = vmatprep.subr.bf16.mxu1 %v4249_v26  ;;  %v2274_v26 = vpop.permute.xlu1 %2273 }
0x150f   :  { %v2256_v7 = vpop.f32.mrb[36].mxu1 }
0x1510   :  { %v2263_v46 = vadd.f32 %v2256_v7, %v4075_v50  ;;  %v2258_v49 = vpop.f32.mrb[37].mxu1 }
0x1511   :  { %v2264_v51 = vadd.f32 %v2258_v49, %v4080_v53  ;;  %v2260_v54 = vpop.f32.mrb[38].mxu1 }
0x1512   :  { %3664 = vtanh.f32 %v2263_v46  ;;  %v2261_v33 = vpop.f32.mrb[39].mxu1 }
0x1513   :  { %3666 = vtanh.f32 %v2264_v51 }
0x151c   :  { %v3665_v15 = vpop.eup %3664 }
0x151d   :  { %v2267_v10 = vadd.f32 1.0, %v3665_v15  ;;  %v3667_v21 = vpop.eup %3666 }
0x151e   :  { %v2269_v53 = vadd.f32 1.0, %v3667_v21 }
0x151f   :  { %v2268_v20 = vmul.f32 0.5, %v2267_v10 }
0x1520   :  { %v2270_v5 = vmul.f32 0.5, %v2269_v53 }
0x1521   :  { %v2277_v22 = vmul.f32 %v3667_v21, %v2268_v20  ;;  %v2276_v27 = vmul.f32 %v2274_v26, %v2268_v20 }
0x1523   :  { %2279 = vrot.lane.b32.xlu0 %v2277_v22, %s3817_s15 }
0x1527   :  { %2069 = vrot.lane.b32.xlu0 %v2067_v29, %s3817_s15 }
0x1595   :  { %v2280_v55 = vpop.permute.xlu0 %2279 }
0x1596   :  { %v2282_v50 = vadd.f32 %v2280_v55, %v2276_v27 }
0x1598   :  { %3668 = vtanh.f32 %v2282_v50 }
0x1599   :  { %v2070_v3 = vpop.permute.xlu0 %2069 }
0x159a   :  { %2072 = vst.msk [vmem:[#allocation4] sm:$0xff] %vm376_vm3, %v2070_v3 }
0x15a1   :  { %v2394_v38 = vld [vmem:[#allocation4] sm:$0xff] }
0x15a2   :  { %v3669_v34 = vpop.eup %3668 }
0x15a3   :  { %v2289_v6 = vmul.f32 %v3669_v34, %v2270_v5 }
0x15a5   :  { %v2290_v36 = vpack.c.bf16 %v2289_v6, %v2289_v6 }
0x15a7   :  { %2300 = vrot.lane.b32.xlu1 %v2290_v36, %s3817_s15 }
0x15ab   :  { %2396 = vrot.lane.b32.xlu1 %v2394_v38, %s3817_s15 }
0x1619   :  { %v2301_v12 = vpop.permute.xlu1 %2300 }
0x161a   :  { %3360 = vmatmul.mubr.msk.bf16.vlgmr.msra.gmra.mrb[32].mxu1 %vm376_vm3, %v2301_v12 }
0x161b   :  { %2807 = vmatpush1.bf16.msra.mxu1 %v4247_v1  ;;  %2838 = vmatprep.mubr.bf16.mxu1 %v3825_v0 }
0x161c   :  { %2808 = vmatprep.subr.bf16.mxu1 %v4251_v11 }
0x161f   :  { %2809 = vmatpush1.bf16.msra.mxu1 %v4256_v30 }
0x1620   :  { %2810 = vmatprep.subr.bf16.mxu1 %v4260_v35 }
0x1623   :  { %2811 = vmatpush1.bf16.msra.mxu1 %v4264_v8 }
0x1624   :  { %2812 = vmatprep.subr.bf16.mxu1 %v4268_v37  ;;  %v2397_v37 = vpop.permute.xlu1 %2396 }
0x1627   :  { %2813 = vmatpush1.bf16.msra.mxu1 %v4272_v25 }
0x1628   :  { %2898 = vmatprep.subr.bf16.mxu1 %v4276_v39 }
0x16ed   :  { %v2379_v29 = vpop.f32.mrb[32].mxu1 }
0x16ee   :  { %v3465_v57 = vadd.f32 %v2379_v29, %v4122_v41  ;;  %v2381_v1 = vpop.f32.mrb[33].mxu1 }
0x16ef   :  { %v2383_v32 = vpop.f32.mrb[34].mxu1  ;;  %v3466_v11 = vadd.f32 %v2381_v1, %v4124_v42 }
0x16f0   :  { %3670 = vtanh.f32 %v3465_v57  ;;  %v2384_v18 = vpop.f32.mrb[35].mxu1 }
0x16f1   :  { %3672 = vtanh.f32 %v3466_v11 }
0x16fa   :  { %v3671_v30 = vpop.eup %3670 }
0x16fb   :  { %v2390_v35 = vadd.f32 1.0, %v3671_v30  ;;  %v3673_v8 = vpop.eup %3672 }
0x16fc   :  { %v2392_v40 = vadd.f32 1.0, %v3673_v8 }
0x16fd   :  { %v2391_v19 = vmul.f32 0.5, %v2390_v35 }
0x16fe   :  { %v2393_v7 = vmul.f32 0.5, %v2392_v40 }
0x16ff   :  { %v2400_v63 = vmul.f32 %v3673_v8, %v2391_v19  ;;  %v2399_v25 = vmul.f32 %v2397_v37, %v2391_v19 }
0x1701   :  { %2402 = vrot.lane.b32.xlu0 %v2400_v63, %s3817_s15 }
0x1705   :  { %2284 = vrot.lane.b32.xlu0 %v2282_v50, %s3817_s15 }
0x1773   :  { %v2403_v39 = vpop.permute.xlu0 %2402 }
0x1774   :  { %v2405_v9 = vadd.f32 %v2403_v39, %v2399_v25 }
0x1776   :  { %3674 = vtanh.f32 %v2405_v9 }
0x1777   :  { %v2285_v58 = vpop.permute.xlu0 %2284 }
0x1778   :  { %2287 = vst.msk [vmem:[#allocation3] sm:$0xff] %vm376_vm3, %v2285_v58 }
0x177f   :  { %v2609_v54 = vld [vmem:[#allocation3] sm:$0xff] }
0x1780   :  { %v3675_v46 = vpop.eup %3674 }
0x1781   :  { %v2412_v49 = vmul.f32 %v3675_v46, %v2393_v7 }
0x1783   :  { %v2413_v51 = vpack.c.bf16 %v2412_v49, %v2412_v49 }
0x1785   :  { %2423 = vrot.lane.b32.xlu1 %v2413_v51, %s3817_s15 }
0x1789   :  { %2611 = vrot.lane.b32.xlu1 %v2609_v54, %s3817_s15 }
0x17f7   :  { %v2424_v33 = vpop.permute.xlu1 %2423 }
0x17f8   :  { %3369 = vmatmul.mubr.msk.bf16.vlgmr.msra.gmra.mrb[32].mxu0 %vm376_vm3, %v2424_v33 }
0x17f9   :  { %2561 = vmatpush1.bf16.msra.mxu0 %v4286_v23  ;;  %2592 = vmatprep.mubr.bf16.mxu0 %v3825_v0 }
0x17fa   :  { %2562 = vmatprep.subr.bf16.mxu0 %v4288_v24 }
0x17fb   :  { %v2612_v5 = vpop.permute.xlu1 %2611 }
0x17fd   :  { %2563 = vmatpush1.bf16.msra.mxu0 %v4292_v28 }
0x17fe   :  { %2564 = vmatprep.subr.bf16.mxu0 %v4296_v43 }
0x1801   :  { %2565 = vmatpush1.bf16.msra.mxu0 %v4299_v44 }
0x1802   :  { %2566 = vmatprep.subr.bf16.mxu0 %v4302_v47 }
0x1805   :  { %2567 = vmatpush1.bf16.msra.mxu0 %v4305_v52 }
0x1806   :  { %2683 = vmatprep.subr.bf16.mxu0 %v4318_v14 }
0x1808   :  { %3378 = vmatmul.mubr.msk.bf16.vlgmr.msra.gmra.mrb[36].mxu0 %vm376_vm3, %v2301_v12 }
0x1809   :  { %2684 = vmatpush1.bf16.msra.mxu0 %v4316_v13  ;;  %2715 = vmatprep.mubr.bf16.mxu0 %v3825_v0 }
0x180a   :  { %2685 = vmatprep.subr.bf16.mxu0 %v4320_v45 }
0x180d   :  { %2686 = vmatpush1.bf16.msra.mxu0 %v4324_v48 }
0x180e   :  { %2687 = vmatprep.subr.bf16.mxu0 %v4327_v60 }
0x1811   :  { %2688 = vmatpush1.bf16.msra.mxu0 %v4330_v16 }
0x1812   :  { %2689 = vmatprep.subr.bf16.mxu0 %v4333_v2 }
0x1815   :  { %2690 = vmatpush1.bf16.msra.mxu0 %v4336_v17 }
0x1816   :  { %3443 = vmatprep.subr.bf16.mxu0 %v3827_v31 }
0x18db   :  { %v2594_v15 = vpop.f32.mrb[36].mxu0 }
0x18dc   :  { %v2601_v10 = vadd.f32 %v2594_v15, %v4085_v56  ;;  %v2596_v20 = vpop.f32.mrb[37].mxu0 }
0x18dd   :  { %v2602_v21 = vadd.f32 %v2596_v20, %v4087_v59  ;;  %v2598_v22 = vpop.f32.mrb[38].mxu0 }
0x18de   :  { %3676 = vtanh.f32 %v2601_v10  ;;  %v2599_v26 = vpop.f32.mrb[39].mxu0 }
0x18df   :  { %3678 = vtanh.f32 %v2602_v21 }
0x18e8   :  { %v3677_v27 = vpop.eup %3676 }
0x18e9   :  { %v2605_v55 = vadd.f32 1.0, %v3677_v27  ;;  %v3679_v3 = vpop.eup %3678 }
0x18ea   :  { %v2607_v59 = vadd.f32 1.0, %v3679_v3 }
0x18eb   :  { %v2606_v50 = vmul.f32 0.5, %v2605_v55 }
0x18ec   :  { %v2608_v38 = vmul.f32 0.5, %v2607_v59 }
0x18ed   :  { %v2615_v53 = vmul.f32 %v3679_v3, %v2606_v50  ;;  %v2614_v34 = vmul.f32 %v2612_v5, %v2606_v50 }
0x18ef   :  { %2617 = vrot.lane.b32.xlu0 %v2615_v53, %s3817_s15 }
0x18f3   :  { %2407 = vrot.lane.b32.xlu0 %v2405_v9, %s3817_s15 }
0x1961   :  { %v2618_v6 = vpop.permute.xlu0 %2617 }
0x1962   :  { %v2620_v56 = vadd.f32 %v2618_v6, %v2614_v34 }
0x1964   :  { %3680 = vtanh.f32 %v2620_v56 }
0x1965   :  { %v2408_v36 = vpop.permute.xlu0 %2407 }
0x1966   :  { %2410 = vst.msk [vmem:[#allocation4] sm:$0xff] %vm376_vm3, %v2408_v36 }
0x196d   :  { %v2732_v1 = vld [vmem:[#allocation4] sm:$0xff] }
0x196e   :  { %v3681_v12 = vpop.eup %3680 }
0x196f   :  { %v2627_v29 = vmul.f32 %v3681_v12, %v2608_v38 }
0x1971   :  { %v2628_v57 = vpack.c.bf16 %v2627_v29, %v2627_v29 }
0x1973   :  { %2638 = vrot.lane.b32.xlu1 %v2628_v57, %s3817_s15  ;;  %v3602_v57 = vld [vmem:[%s4506_s7 + $0x10] sm:$0xff]  }
0x1977   :  { %2734 = vrot.lane.b32.xlu1 %v2732_v1, %s3817_s15  ;;  %v3603_v1 = vld [vmem:[%s4506_s7 + $0x18] sm:$0xff]  }
0x19e5   :  { %v2639_v32 = vpop.permute.xlu1 %2638 }
0x19e6   :  { %3387 = vmatmul.mubr.msk.bf16.vlgmr.msra.gmra.mrb[32].mxu0 %vm376_vm3, %v2639_v32 }
0x19e7   :  { %3451 = vmatprep.mubr.msk.bf16.mxu0 %vm3828_vm5, %v3827_v31 }
0x19e9   :  { %v2735_v58 = vpop.permute.xlu1 %2734 }
0x1ab9   :  { %v2717_v11 = vpop.f32.mrb[32].mxu0 }
0x1aba   :  { %v3467_v18 = vadd.f32 %v2717_v11, %v4122_v41  ;;  %v2719_v30 = vpop.f32.mrb[33].mxu0 }
0x1abb   :  { %v2721_v35 = vpop.f32.mrb[34].mxu0  ;;  %v3468_v19 = vadd.f32 %v2719_v30, %v4124_v42 }
0x1abc   :  { %3682 = vtanh.f32 %v3467_v18  ;;  %v2722_v8 = vpop.f32.mrb[35].mxu0 }
0x1abd   :  { %3684 = vtanh.f32 %v3468_v19 }
0x1ac6   :  { %v3683_v63 = vpop.eup %3682 }
0x1ac7   :  { %v2728_v37 = vadd.f32 1.0, %v3683_v63  ;;  %v3685_v39 = vpop.eup %3684 }
0x1ac8   :  { %v2730_v51 = vadd.f32 1.0, %v3685_v39 }
0x1ac9   :  { %v2729_v25 = vmul.f32 0.5, %v2728_v37 }
0x1aca   :  { %v2731_v54 = vmul.f32 0.5, %v2730_v51 }
0x1acb   :  { %v2738_v9 = vmul.f32 %v3685_v39, %v2729_v25  ;;  %v2737_v40 = vmul.f32 %v2735_v58, %v2729_v25 }
0x1acd   :  { %2740 = vrot.lane.b32.xlu0 %v2738_v9, %s3817_s15  ;;  %v3098_v9 = vld [vmem:[%s4506_s7 + $0x20] sm:$0x1] }
0x1ace   :  { %v3099_v58 = vunpack.c.l.bf16 %v3098_v9 }
0x1ad1   :  { %2622 = vrot.lane.b32.xlu0 %v2620_v56, %s3817_s15 }
0x1b3f   :  { %v2741_v7 = vpop.permute.xlu0 %2740 }
0x1b40   :  { %v2743_v46 = vadd.f32 %v2741_v7, %v2737_v40  ;;  %v3103_v40 = vrot.slane %v3099_v58, %v4047_v61 }
0x1b42   :  { %3686 = vtanh.f32 %v2743_v46 }
0x1b43   :  { %v2623_v49 = vpop.permute.xlu0 %2622 }
0x1b44   :  { %2625 = vst.msk [vmem:[#allocation3] sm:$0xff] %vm376_vm3, %v2623_v49 }
0x1b4b   :  { %v2947_v20 = vld [vmem:[#allocation3] sm:$0xff] }
0x1b4c   :  { %v3687_v33 = vpop.eup %3686 }
0x1b4d   :  { %v2750_v15 = vmul.f32 %v3687_v33, %v2731_v54 }
0x1b4f   :  { %v2751_v10 = vpack.c.bf16 %v2750_v15, %v2750_v15 }
0x1b51   :  { %2761 = vrot.lane.b32.xlu1 %v2751_v10, %s3817_s15 }
0x1b55   :  { %2949 = vrot.lane.b32.xlu1 %v2947_v20, %s3817_s15 }
0x1bc3   :  { %v2762_v21 = vpop.permute.xlu1 %2761 }
0x1bc4   :  { %3396 = vmatmul.mubr.msk.bf16.vlgmr.msra.gmra.mrb[40].mxu1 %vm376_vm3, %v2762_v21 }
0x1bc5   :  { %2899 = vmatpush1.bf16.msra.mxu1 %v4286_v23  ;;  %2930 = vmatprep.mubr.bf16.mxu1 %v3825_v0 }
0x1bc6   :  { %2900 = vmatprep.subr.bf16.mxu1 %v4288_v24 }
0x1bc9   :  { %2901 = vmatpush1.bf16.msra.mxu1 %v4292_v28 }
0x1bca   :  { %2902 = vmatprep.subr.bf16.mxu1 %v4296_v43 }
0x1bcd   :  { %2903 = vmatpush1.bf16.msra.mxu1 %v4299_v44 }
0x1bce   :  { %2904 = vmatprep.subr.bf16.mxu1 %v4302_v47 }
0x1bd1   :  { %2905 = vmatpush1.bf16.msra.mxu1 %v4305_v52 }
0x1bd2   :  { %3021 = vmatprep.subr.bf16.mxu1 %v4318_v14 }
0x1bd4   :  { %3405 = vmatmul.mubr.msk.bf16.vlgmr.msra.gmra.mrb[44].mxu1 %vm376_vm3, %v2639_v32 }
0x1bd5   :  { %3022 = vmatpush1.bf16.msra.mxu1 %v4316_v13  ;;  %3053 = vmatprep.mubr.bf16.mxu1 %v3825_v0 }
0x1bd6   :  { %3023 = vmatprep.subr.bf16.mxu1 %v4320_v45 }
0x1bd9   :  { %3024 = vmatpush1.bf16.msra.mxu1 %v4324_v48  ;;  %v2950_v48 = vpop.permute.xlu1 %2949 }
0x1bda   :  { %3025 = vmatprep.subr.bf16.mxu1 %v4327_v60 }
0x1bdd   :  { %3026 = vmatpush1.bf16.msra.mxu1 %v4330_v16 }
0x1bde   :  { %3027 = vmatprep.subr.bf16.mxu1 %v4333_v2 }
0x1be1   :  { %3028 = vmatpush1.bf16.msra.mxu1 %v4336_v17 }
0x1ca7   :  { %v2932_v23 = vpop.f32.mrb[44].mxu1 }
0x1ca8   :  { %v2939_v24 = vadd.f32 %v2932_v23, %v4089_v62  ;;  %v2934_v28 = vpop.f32.mrb[45].mxu1 }
0x1ca9   :  { %v2940_v43 = vadd.f32 %v2934_v28, %v4094_v4  ;;  %v2936_v44 = vpop.f32.mrb[46].mxu1 }
0x1caa   :  { %3688 = vtanh.f32 %v2939_v24  ;;  %v2937_v0 = vpop.f32.mrb[47].mxu1 }
0x1cab   :  { %3690 = vtanh.f32 %v2940_v43 }
0x1cb4   :  { %v3689_v47 = vpop.eup %3688 }
0x1cb5   :  { %v2943_v52 = vadd.f32 1.0, %v3689_v47  ;;  %v3691_v14 = vpop.eup %3690 }
0x1cb6   :  { %v2945_v4 = vadd.f32 1.0, %v3691_v14 }
0x1cb7   :  { %v2944_v13 = vmul.f32 0.5, %v2943_v52 }
0x1cb8   :  { %v2946_v17 = vmul.f32 0.5, %v2945_v4 }
0x1cb9   :  { %v2953_v45 = vmul.f32 %v3691_v14, %v2944_v13  ;;  %v2952_v60 = vmul.f32 %v2950_v48, %v2944_v13 }
0x1cbb   :  { %2955 = vrot.lane.b32.xlu0 %v2953_v45, %s3817_s15 }
0x1cbf   :  { %2745 = vrot.lane.b32.xlu0 %v2743_v46, %s3817_s15 }
0x1d2d   :  { %v2956_v16 = vpop.permute.xlu0 %2955 }
0x1d2e   :  { %v2958_v62 = vadd.f32 %v2956_v16, %v2952_v60 }
0x1d30   :  { %3692 = vtanh.f32 %v2958_v62 }
0x1d31   :  { %v2746_v2 = vpop.permute.xlu0 %2745 }
0x1d32   :  { %2748 = vst.msk [vmem:[#allocation4] sm:$0xff] %vm376_vm3, %v2746_v2 }
0x1d39   :  { %v3070_v55 = vld [vmem:[#allocation4] sm:$0xff] }
0x1d3a   :  { %v3693_v22 = vpop.eup %3692 }
0x1d3b   :  { %v2965_v26 = vmul.f32 %v3693_v22, %v2946_v17 }
0x1d3d   :  { %v2966_v27 = vpack.c.bf16 %v2965_v26, %v2965_v26 }
0x1d3f   :  { %2976 = vrot.lane.b32.xlu1 %v2966_v27, %s3817_s15 }
0x1d43   :  { %3072 = vrot.lane.b32.xlu1 %v3070_v55, %s3817_s15 }
0x1db1   :  { %v2977_v50 = vpop.permute.xlu1 %2976 }
0x1db2   :  { %3414 = vmatmul.mubr.msk.bf16.vlgmr.msra.gmra.mrb[40].mxu1 %vm376_vm3, %v2977_v50 }
0x1db5   :  { %v3073_v32 = vpop.permute.xlu1 %3072 }
0x1e85   :  { %v3055_v3 = vpop.f32.mrb[40].mxu1 }
0x1e86   :  { %v3469_v53 = vadd.f32 %v3055_v3, %v4122_v41  ;;  %v3057_v5 = vpop.f32.mrb[41].mxu1  ;;  %v3600_v41 = vld [vmem:[%s4506_s7] sm:$0xff]  }
0x1e87   :  { %v3059_v34 = vpop.f32.mrb[42].mxu1  ;;  %v3470_v6 = vadd.f32 %v3057_v5, %v4124_v42  ;;  %3444 = vmatpush3.bf16.msra.mxu0 %v3600_v41  ;;  %v3601_v42 = vld [vmem:[%s4506_s7 + $0x8] sm:$0xff]  }
0x1e88   :  { %3694 = vtanh.f32 %v3469_v53  ;;  %v3060_v56 = vpop.f32.mrb[43].mxu1  ;;  %3445 = vmatprep.subr.bf16.mxu0 %v3827_v31 }
0x1e89   :  { %3696 = vtanh.f32 %v3470_v6 }
0x1e8b   :  { %3446 = vmatpush3.bf16.msra.mxu0 %v3601_v42 }
0x1e8c   :  { %3447 = vmatprep.subr.bf16.mxu0 %v3827_v31 }
0x1e8f   :  { %3448 = vmatpush3.bf16.msra.mxu0 %v3602_v57 }
0x1e90   :  { %3449 = vmatprep.subr.bf16.mxu0 %v3827_v31 }
0x1e92   :  { %v3695_v36 = vpop.eup %3694 }
0x1e93   :  { %v3066_v59 = vadd.f32 1.0, %v3695_v36  ;;  %v3697_v12 = vpop.eup %3696  ;;  %3450 = vmatpush3.bf16.msra.mxu0 %v3603_v1 }
0x1e94   :  { %v3068_v19 = vadd.f32 1.0, %v3697_v12 }
0x1e95   :  { %v3067_v38 = vmul.f32 0.5, %v3066_v59 }
0x1e96   :  { %v3069_v8 = vmul.f32 0.5, %v3068_v19 }
0x1e97   :  { %v3076_v29 = vmul.f32 %v3697_v12, %v3067_v38  ;;  %v3075_v11 = vmul.f32 %v3073_v32, %v3067_v38 }
0x1e99   :  { %3078 = vrot.lane.b32.xlu0 %v3076_v29, %s3817_s15 }
0x1e9d   :  { %2960 = vrot.lane.b32.xlu0 %v2958_v62, %s3817_s15 }
0x1f0b   :  { %v3079_v18 = vpop.permute.xlu0 %3078 }
0x1f0c   :  { %v3081_v30 = vadd.f32 %v3079_v18, %v3075_v11 }
0x1f0e   :  { %3698 = vtanh.f32 %v3081_v30 }
0x1f0f   :  { %v2961_v35 = vpop.permute.xlu0 %2960 }
0x1f10   :  { %2963 = vst.msk [vmem:[#allocation3] sm:$0xff] %vm376_vm3, %v2961_v35 }
0x1f18   :  { %v3699_v63 = vpop.eup %3698 }
0x1f19   :  { %v3088_v37 = vmul.f32 %v3699_v63, %v3069_v8 }
0x1f1b   :  { %v3089_v25 = vpack.c.bf16 %v3088_v37, %v3088_v37 }
0x1f1d   :  { %3105 = vrot.lane.b32.xlu1 %v3089_v25, %s3817_s15 }
0x1f21   :  { %3083 = vrot.lane.b32.xlu1 %v3081_v30, %s3817_s15 }
0x1f8f   :  { %v3106_v39 = vpop.permute.xlu1 %3105 }
0x1f90   :  { %3452 = vmatmul.mubr.msk.bf16.vlgmr.msra.gmra.mrb[40].mxu0 %vm376_vm3, %v3106_v39 }
0x1f93   :  { %v3084_v31 = vpop.permute.xlu1 %3083 }
0x1f94   :  { %3086 = vst.msk [vmem:[#allocation4] sm:$0xff] %vm376_vm3, %v3084_v31 }
0x2063   :  { %v3168_v7 = vpop.f32.mrb[40].mxu0 }
0x2064   :  { %v3169_v46 = vadd.f32 %v3168_v7, %v3103_v40  ;;  %v3453_v49 = vpop.f32.mrb[41].mxu0 }
0x2065   :  { %v3171_v51 = vpop.f32.mrb[42].mxu0 }
0x2066   :  { %3175 = vst.msk [vmem:[%s4507_s8] sm:$0xff] %vm3174_vm6, %v3169_v46  ;;  %v3454_v54 = vpop.f32.mrb[43].mxu0 }
0x2067   :  { %3180 = vsyncpa [#allocation6], 1 }
0x2068   :  { %3181 = vsyncpa [#allocation8], 1 }
0x2069   :  { %3182 = vsyncpa [#allocation11], 1 }

</bundles_post_ra>
